<compile_context>
chip_gen: v7x
topology: tpu7x:2x2x1
jax: 0.10.0
libtpu: 0.0.40
codegen_flags: <defaults>
</compile_context>

<pallas_src>
import functools

import jax
import jax.numpy as jnp
from jax import lax
from jax.experimental import pallas as pl
from jax.experimental.pallas import tpu as pltpu

EPS = 1e-3  # nn.BatchNorm2d(eps=0.001)


# ------------------------------ Pallas kernel ------------------------------ #

def _audio_block_kernel(h_pos_ref, w_pos_ref, x_ref,
                        w1_ref, g1_ref, b1_ref,
                        w2_ref, g2_ref, b2_ref,
                        w3_ref, g3_ref, b3_ref,
                        w4_ref, g4_ref, b4_ref,
                        o_ref, stack_ref, *, H, W, cpad, p_max, eps):
    """Fused (1-D conv -> BN(batch stats) -> ReLU) x 4, channels-first layout.

    h_pos_ref, w_pos_ref : [1, N] int32   h / w coordinate of each flat pos
    x_ref                : [Cin, N]       activation, N = B*H*W on lanes
    w*_ref               : [Cout, K*cpad] bf16 tap-stacked conv weights
    g*_ref, b*_ref       : [Cout, 1]      BatchNorm affine parameters
    o_ref                : [Cout, N]
    stack_ref            : [Kmax*cpad, N] bf16 tap-stack staging buffer
    """
    N = x_ref.shape[1]

    # One-time zeroing: pad rows (ci..cpad of each tap block) are read by the
    # stacked matmul but may never be written; uninitialized VMEM can contain
    # NaN bit patterns and NaN * 0-weight = NaN would corrupt the accumulation.
    stack_ref[...] = jnp.zeros_like(stack_ref)

    # Boundary-validity masks: computed once, reused by every layer / tap.
    h_pos = h_pos_ref[...]
    w_pos = w_pos_ref[...]
    masks = {}
    for d in range(1, p_max + 1):
        masks[("h", d)] = h_pos < (H - d)
        masks[("h", -d)] = h_pos >= d
        masks[("w", d)] = w_pos < (W - d)
        masks[("w", -d)] = w_pos >= d

    def layer(x, w_ref, g_ref, b_ref, axis, step):
        ci = x.shape[0]
        K = w_ref.shape[1] // cpad
        p = (K - 1) // 2

        # Pack the K tap-shifted (and boundary-masked) activations into the
        # bf16 stack; every block starts at a sublane-tile-aligned row offset.
        # Wrapped lanes from the roll are exactly the ones the mask zeroes, so
        # the semantics match zero-padded convolution.
        for k in range(K):                       # K is 3 or 5: static, unrolled
            d = k - p                            # displacement along conv axis
            tap = x
            if d != 0:
                tap = pltpu.roll(x, shift=(-d * step) % N, axis=1)
                tap = jnp.where(masks[(axis, d)], tap, 0.0)
            stack_ref[k * cpad:k * cpad + ci, :] = tap.astype(stack_ref.dtype)

        # Single deep-contraction MXU matmul: [Cout, K*cpad] @ [K*cpad, N].
        acc = jnp.dot(w_ref[...], stack_ref[0:K * cpad, :],
                      preferred_element_type=jnp.float32)

        # BatchNorm2d training-mode forward: per-channel batch mean / biased
        # variance over N = B*H*W (centered two-pass), folded scale/shift, ReLU.
        mean = jnp.mean(acc, axis=1, keepdims=True)
        centered = acc - mean
        var = jnp.mean(centered * centered, axis=1, keepdims=True)
        scale = g_ref[...] * lax.rsqrt(var + eps)
        return jnp.maximum(centered * scale + b_ref[...], 0.0)

    x = x_ref[...]
    x = layer(x, w1_ref, g1_ref, b1_ref, "h", W)   # m_1: conv along H
    x = layer(x, w2_ref, g2_ref, b2_ref, "h", W)   # m_2: conv along H
    x = layer(x, w3_ref, g3_ref, b3_ref, "w", 1)   # t_1: conv along W
    x = layer(x, w4_ref, g4_ref, b4_ref, "w", 1)   # t_2: conv along W
    o_ref[...] = x.astype(o_ref.dtype)


# --------------------------------- wrapper --------------------------------- #

@jax.jit
def audio_block_forward(x_nchw, params):
    """NCHW -> NCHW forward of Audio_Block as a single fused Pallas kernel."""
    B, Cin, H, W = x_nchw.shape
    k1, c_mid, _ = params["w_m1"].shape
    k2, c_out, _ = params["w_m2"].shape
    N = B * H * W
    p_max = max((k1 - 1) // 2, (k2 - 1) // 2)
    k_max = max(k1, k2)
    c_max = max(Cin, c_mid, c_out)
    cpad = ((c_max + 15) // 16) * 16          # bf16 sublane tile = 16 rows

    # Flat-position coordinates used for the boundary masks inside the kernel.
    n = jnp.arange(N, dtype=jnp.int32)
    h_pos = ((n // W) % H).reshape(1, N)
    w_pos = (n % W).reshape(1, N)

    # Channels-first flat layout [C, B*H*W]: N on the 128-lane axis.
    x_cn = jnp.transpose(x_nchw, (1, 0, 2, 3)).reshape(Cin, N)

    def stack_weights(w):
        # [K, Cout, Cin] -> [Cout, K*cpad] bf16; pad Cin columns are zero.
        K, co, ci = w.shape
        w_p = jnp.pad(w, ((0, 0), (0, 0), (0, cpad - ci)))
        return jnp.transpose(w_p, (1, 0, 2)).reshape(co, K * cpad).astype(jnp.bfloat16)

    args = [h_pos, w_pos, x_cn]
    for tag in ("m1", "m2", "t1", "t2"):
        w = params[f"w_{tag}"]
        co = w.shape[1]
        args += [stack_weights(w), params[f"g_{tag}"].reshape(co, 1),
                 params[f"b_{tag}"].reshape(co, 1)]

    # VMEM budget derived from the actual buffers (inputs + output + tap stack
    # + live f32 intermediates) with headroom, instead of a hard-coded 32 MiB.
    stack_bytes = k_max * cpad * N * 2
    live_bytes = 2 * c_max * N * 4
    io_bytes = sum(int(a.size) * a.dtype.itemsize for a in args) + c_out * N * 4
    vmem_limit = int(min(64 << 20,                      # safe cap on all gens
                         max(16 << 20,
                             2 * (io_bytes + stack_bytes + live_bytes) + (4 << 20))))

    kernel = functools.partial(_audio_block_kernel, H=H, W=W, cpad=cpad,
                               p_max=p_max, eps=EPS)
    out_cn = pl.pallas_call(
        kernel,
        out_shape=jax.ShapeDtypeStruct((c_out, N), x_nchw.dtype),
        in_specs=[pl.BlockSpec(memory_space=pltpu.MemorySpace.VMEM)] * len(args),
        out_specs=pl.BlockSpec(memory_space=pltpu.MemorySpace.VMEM),
        scratch_shapes=[pltpu.VMEM((k_max * cpad, N), jnp.bfloat16)],
        compiler_params=pltpu.CompilerParams(vmem_limit_bytes=vmem_limit),
    )(*args)
    return jnp.transpose(out_cn.reshape(c_out, B, H, W), (1, 0, 2, 3))


# ----------------------- pure-JAX reference (no Pallas) -------------------- #

def _ref_layer(x_nhwc, w_taps, gamma, beta, axis):
    K = w_taps.shape[0]
    p = (K - 1) // 2
    w_hwio = jnp.transpose(w_taps, (0, 2, 1))       # [K, Cin, Cout]
    if axis == 1:
        w = w_hwio[:, None, :, :]                   # (K, 1, Cin, Cout)
        padding = ((p, p), (0, 0))
    else:
        w = w_hwio[None, :, :, :]                   # (1, K, Cin, Cout)
        padding = ((0, 0), (p, p))
    y = lax.conv_general_dilated(
        x_nhwc, w, window_strides=(1, 1), padding=padding,
        dimension_numbers=("NHWC", "HWIO", "NHWC"),
        precision=lax.Precision.HIGHEST)
    mean = jnp.mean(y, axis=(0, 1, 2), keepdims=True)
    var = jnp.mean((y - mean) ** 2, axis=(0, 1, 2), keepdims=True)
    y = (y - mean) * lax.rsqrt(var + EPS) * gamma + beta
    return jnp.maximum(y, 0.0)


def audio_block_reference(x_nchw, params):
    x = jnp.transpose(x_nchw, (0, 2, 3, 1))
    x = _ref_layer(x, params["w_m1"], params["g_m1"], params["b_m1"], axis=1)
    x = _ref_layer(x, params["w_m2"], params["g_m2"], params["b_m2"], axis=1)
    x = _ref_layer(x, params["w_t1"], params["g_t1"], params["b_t1"], axis=2)
    x = _ref_layer(x, params["w_t2"], params["g_t2"], params["b_t2"], axis=2)
    return jnp.transpose(x, (0, 3, 1, 2))


# -------------------------------- parameters -------------------------------- #

def init_params(key, in_channels, out_channels, kernel_1, kernel_2):
    """Synthetic parameters with the module's shapes.

    Conv weights are stored tap-major as [K, Cout, Cin] (PyTorch stores
    [Cout, Cin, K, 1] / [Cout, Cin, 1, K]; same contraction).
    """
    c_mid = out_channels // 2
    keys = jax.random.split(key, 12)

    def conv_w(k, K, cin, cout):
        return jax.random.normal(k, (K, cout, cin), jnp.float32) / jnp.sqrt(K * cin)

    def bn(kg, kb, c):
        gamma = 1.0 + 0.1 * jax.random.normal(kg, (c,), jnp.float32)
        beta = 0.1 * jax.random.normal(kb, (c,), jnp.float32)
        return gamma, beta

    p = {}
    p["w_m1"] = conv_w(keys[0], kernel_1, in_channels, c_mid)
    p["g_m1"], p["b_m1"] = bn(keys[1], keys[2], c_mid)
    p["w_m2"] = conv_w(keys[3], kernel_2, c_mid, out_channels)
    p["g_m2"], p["b_m2"] = bn(keys[4], keys[5], out_channels)
    p["w_t1"] = conv_w(keys[6], kernel_1, out_channels, out_channels)
    p["g_t1"], p["b_t1"] = bn(keys[7], keys[8], out_channels)
    p["w_t2"] = conv_w(keys[9], kernel_2, out_channels, out_channels)
    p["g_t2"], p["b_t2"] = bn(keys[10], keys[11], out_channels)
    return p


# ----------------------------------- main ----------------------------------- #

if __name__ == "__main__":
    key = jax.random.PRNGKey(0)
    kx, kp = jax.random.split(key)

    B, Cin, H, W = 2, 4, 16, 16
    out_channels, kernel_1, kernel_2 = 8, 3, 5

    x = jax.random.normal(kx, (B, Cin, H, W), jnp.float32)
    params = init_params(kp, Cin, out_channels, kernel_1, kernel_2)

    out = jax.block_until_ready(audio_block_forward(x, params))
    ref = jax.block_until_ready(audio_block_reference(x, params))

    assert out.shape == (B, out_channels, H, W), out.shape
    max_err = float(jnp.max(jnp.abs(out - ref)))
    # Kernel matmuls use bf16 operands (f32 accumulation) stacked over four
    # conv+BN layers while the reference is full-f32/HIGHEST; tolerance is
    # sized for that rounding.  Structural bugs (wrong tap / mask / BN axis)
    # produce O(1) errors on the unit-variance activations and are still caught.
    assert jnp.allclose(out, ref, atol=7.5e-2, rtol=5e-2), f"max_err={max_err}"

    print("KERNEL_OK")
</pallas_src>

<mosaic_0001>
module attributes {stable_mosaic.version = 11 : i64} {
  func.func @_audio_block_kernel(%arg0: memref<1x512xi32, #tpu.memory_space<vmem>>, %arg1: memref<1x512xi32, #tpu.memory_space<vmem>>, %arg2: memref<4x512xf32, #tpu.memory_space<vmem>>, %arg3: memref<4x48xbf16, #tpu.memory_space<vmem>>, %arg4: memref<4x1xf32, #tpu.memory_space<vmem>>, %arg5: memref<4x1xf32, #tpu.memory_space<vmem>>, %arg6: memref<8x80xbf16, #tpu.memory_space<vmem>>, %arg7: memref<8x1xf32, #tpu.memory_space<vmem>>, %arg8: memref<8x1xf32, #tpu.memory_space<vmem>>, %arg9: memref<8x48xbf16, #tpu.memory_space<vmem>>, %arg10: memref<8x1xf32, #tpu.memory_space<vmem>>, %arg11: memref<8x1xf32, #tpu.memory_space<vmem>>, %arg12: memref<8x80xbf16, #tpu.memory_space<vmem>>, %arg13: memref<8x1xf32, #tpu.memory_space<vmem>>, %arg14: memref<8x1xf32, #tpu.memory_space<vmem>>, %arg15: memref<8x512xf32, #tpu.memory_space<vmem>>, %arg16: memref<80x512xbf16, #tpu.memory_space<vmem>>) attributes {dimension_semantics = [], scalar_prefetch = 0 : i64, scratch_operands = 1 : i64, tpu.core_type = #tpu.core_type<tc>} {
    %cst = arith.constant 0.000000e+00 : bf16
    %0 = vector.broadcast %cst : bf16 to vector<80x512xbf16>
    %c0 = arith.constant 0 : index
    %c0_0 = arith.constant 0 : index
    %1 = vector.load %arg16[%c0, %c0_0] : memref<80x512xbf16, #tpu.memory_space<vmem>>, vector<80x512xbf16>
    tpu.vector_store %arg16[%c0, %c0_0], %0 {strides = array<i32>} : memref<80x512xbf16, #tpu.memory_space<vmem>>, vector<80x512xbf16>,
    %c0_1 = arith.constant 0 : index
    %c0_2 = arith.constant 0 : index
    %2 = vector.load %arg0[%c0_1, %c0_2] : memref<1x512xi32, #tpu.memory_space<vmem>>, vector<1x512xi32>
    %c0_3 = arith.constant 0 : index
    %c0_4 = arith.constant 0 : index
    %3 = vector.load %arg1[%c0_3, %c0_4] : memref<1x512xi32, #tpu.memory_space<vmem>>, vector<1x512xi32>
    %c15_i32 = arith.constant 15 : i32
    %4 = vector.broadcast %c15_i32 : i32 to vector<1x512xi32>
    %5 = arith.cmpi slt, %2, %4 : vector<1x512xi32>
    %c1_i32 = arith.constant 1 : i32
    %6 = vector.broadcast %c1_i32 : i32 to vector<1x512xi32>
    %7 = arith.cmpi sge, %2, %6 : vector<1x512xi32>
    %c15_i32_5 = arith.constant 15 : i32
    %8 = vector.broadcast %c15_i32_5 : i32 to vector<1x512xi32>
    %9 = arith.cmpi slt, %3, %8 : vector<1x512xi32>
    %c1_i32_6 = arith.constant 1 : i32
    %10 = vector.broadcast %c1_i32_6 : i32 to vector<1x512xi32>
    %11 = arith.cmpi sge, %3, %10 : vector<1x512xi32>
    %c14_i32 = arith.constant 14 : i32
    %12 = vector.broadcast %c14_i32 : i32 to vector<1x512xi32>
    %13 = arith.cmpi slt, %2, %12 : vector<1x512xi32>
    %c2_i32 = arith.constant 2 : i32
    %14 = vector.broadcast %c2_i32 : i32 to vector<1x512xi32>
    %15 = arith.cmpi sge, %2, %14 : vector<1x512xi32>
    %c14_i32_7 = arith.constant 14 : i32
    %16 = vector.broadcast %c14_i32_7 : i32 to vector<1x512xi32>
    %17 = arith.cmpi slt, %3, %16 : vector<1x512xi32>
    %c2_i32_8 = arith.constant 2 : i32
    %18 = vector.broadcast %c2_i32_8 : i32 to vector<1x512xi32>
    %19 = arith.cmpi sge, %3, %18 : vector<1x512xi32>
    %c0_9 = arith.constant 0 : index
    %c0_10 = arith.constant 0 : index
    %20 = vector.load %arg2[%c0_9, %c0_10] : memref<4x512xf32, #tpu.memory_space<vmem>>, vector<4x512xf32>
    %c16_i32 = arith.constant 16 : i32
    %21 = tpu.dynamic_rotate %20 by %c16_i32 dim 1 : vector<4x512xf32>, i32 -> vector<4x512xf32>
    %cst_11 = arith.constant 0.000000e+00 : f32
    %22 = vector.shape_cast %7 : vector<1x512xi1> to vector<1x512xi1>
    %23 = vector.broadcast %22 : vector<1x512xi1> to vector<4x512xi1>
    %24 = vector.broadcast %cst_11 : f32 to vector<4x512xf32>
    %25 = arith.select %23, %21, %24 : vector<4x512xi1>, vector<4x512xf32>
    %26 = arith.truncf %25 : vector<4x512xf32> to vector<4x512xbf16>
    %c0_12 = arith.constant 0 : index
    %c0_13 = arith.constant 0 : index
    %27 = vector.load %arg16[%c0_12, %c0_13] : memref<80x512xbf16, #tpu.memory_space<vmem>>, vector<4x512xbf16>
    tpu.vector_store %arg16[%c0_12, %c0_13], %26 {strides = array<i32>} : memref<80x512xbf16, #tpu.memory_space<vmem>>, vector<4x512xbf16>,
    %28 = arith.truncf %20 : vector<4x512xf32> to vector<4x512xbf16>
    %c16 = arith.constant 16 : index
    %c0_14 = arith.constant 0 : index
    %29 = vector.load %arg16[%c16, %c0_14] : memref<80x512xbf16, #tpu.memory_space<vmem>>, vector<4x512xbf16>
    tpu.vector_store %arg16[%c16, %c0_14], %28 {strides = array<i32>} : memref<80x512xbf16, #tpu.memory_space<vmem>>, vector<4x512xbf16>,
    %c496_i32 = arith.constant 496 : i32
    %30 = tpu.dynamic_rotate %20 by %c496_i32 dim 1 : vector<4x512xf32>, i32 -> vector<4x512xf32>
    %cst_15 = arith.constant 0.000000e+00 : f32
    %31 = vector.shape_cast %5 : vector<1x512xi1> to vector<1x512xi1>
    %32 = vector.broadcast %31 : vector<1x512xi1> to vector<4x512xi1>
    %33 = vector.broadcast %cst_15 : f32 to vector<4x512xf32>
    %34 = arith.select %32, %30, %33 : vector<4x512xi1>, vector<4x512xf32>
    %35 = arith.truncf %34 : vector<4x512xf32> to vector<4x512xbf16>
    %c32 = arith.constant 32 : index
    %c0_16 = arith.constant 0 : index
    %36 = vector.load %arg16[%c32, %c0_16] : memref<80x512xbf16, #tpu.memory_space<vmem>>, vector<4x512xbf16>
    tpu.vector_store %arg16[%c32, %c0_16], %35 {strides = array<i32>} : memref<80x512xbf16, #tpu.memory_space<vmem>>, vector<4x512xbf16>,
    %c0_17 = arith.constant 0 : index
    %c0_18 = arith.constant 0 : index
    %37 = vector.load %arg3[%c0_17, %c0_18] : memref<4x48xbf16, #tpu.memory_space<vmem>>, vector<4x48xbf16>
    %c0_19 = arith.constant 0 : index
    %c0_20 = arith.constant 0 : index
    %38 = vector.load %arg16[%c0_19, %c0_20] : memref<80x512xbf16, #tpu.memory_space<vmem>>, vector<48x512xbf16>
    %cst_21 = arith.constant dense<0.000000e+00> : vector<4x512xf32>
    %39 = tpu.matmul %37, %38, %cst_21 {dimension_numbers = #tpu.dot_dimension_numbers<[1], [0], [0], [1], [0, 0, 1, 1], [], []>} : vector<4x48xbf16>, vector<48x512xbf16>, vector<4x512xf32> -> vector<4x512xf32>
    %cst_22 = arith.constant dense<0.000000e+00> : vector<4xf32>
    %40 = vector.multi_reduction <add>, %39, %cst_22 [1] : vector<4x512xf32> to vector<4xf32>
    %41 = vector.shape_cast %40 : vector<4xf32> to vector<4x1xf32>
    %cst_23 = arith.constant 5.120000e+02 : f32
    %42 = vector.broadcast %cst_23 : f32 to vector<4x1xf32>
    %43 = arith.divf %41, %42 : vector<4x1xf32>
    %44 = vector.broadcast %43 : vector<4x1xf32> to vector<4x512xf32>
    %45 = arith.subf %39, %44 : vector<4x512xf32>
    %46 = arith.mulf %45, %45 : vector<4x512xf32>
    %cst_24 = arith.constant dense<0.000000e+00> : vector<4xf32>
    %47 = vector.multi_reduction <add>, %46, %cst_24 [1] : vector<4x512xf32> to vector<4xf32>
    %48 = vector.shape_cast %47 : vector<4xf32> to vector<4x1xf32>
    %cst_25 = arith.constant 5.120000e+02 : f32
    %49 = vector.broadcast %cst_25 : f32 to vector<4x1xf32>
    %50 = arith.divf %48, %49 : vector<4x1xf32>
    %c0_26 = arith.constant 0 : index
    %c0_27 = arith.constant 0 : index
    %51 = vector.load %arg4[%c0_26, %c0_27] : memref<4x1xf32, #tpu.memory_space<vmem>>, vector<4x1xf32>
    %cst_28 = arith.constant 1.000000e-03 : f32
    %52 = vector.broadcast %cst_28 : f32 to vector<4x1xf32>
    %53 = arith.addf %50, %52 : vector<4x1xf32>
    %54 = math.rsqrt %53 : vector<4x1xf32>
    %55 = arith.mulf %51, %54 : vector<4x1xf32>
    %56 = vector.broadcast %55 : vector<4x1xf32> to vector<4x512xf32>
    %57 = arith.mulf %45, %56 : vector<4x512xf32>
    %c0_29 = arith.constant 0 : index
    %c0_30 = arith.constant 0 : index
    %58 = vector.load %arg5[%c0_29, %c0_30] : memref<4x1xf32, #tpu.memory_space<vmem>>, vector<4x1xf32>
    %59 = vector.broadcast %58 : vector<4x1xf32> to vector<4x512xf32>
    %60 = arith.addf %57, %59 : vector<4x512xf32>
    %cst_31 = arith.constant 0.000000e+00 : f32
    %61 = vector.broadcast %cst_31 : f32 to vector<4x512xf32>
    %62 = arith.maximumf %60, %61 : vector<4x512xf32>
    %c32_i32 = arith.constant 32 : i32
    %63 = tpu.dynamic_rotate %62 by %c32_i32 dim 1 : vector<4x512xf32>, i32 -> vector<4x512xf32>
    %cst_32 = arith.constant 0.000000e+00 : f32
    %64 = vector.shape_cast %15 : vector<1x512xi1> to vector<1x512xi1>
    %65 = vector.broadcast %64 : vector<1x512xi1> to vector<4x512xi1>
    %66 = vector.broadcast %cst_32 : f32 to vector<4x512xf32>
    %67 = arith.select %65, %63, %66 : vector<4x512xi1>, vector<4x512xf32>
    %68 = arith.truncf %67 : vector<4x512xf32> to vector<4x512xbf16>
    %c0_33 = arith.constant 0 : index
    %c0_34 = arith.constant 0 : index
    %69 = vector.load %arg16[%c0_33, %c0_34] : memref<80x512xbf16, #tpu.memory_space<vmem>>, vector<4x512xbf16>
    tpu.vector_store %arg16[%c0_33, %c0_34], %68 {strides = array<i32>} : memref<80x512xbf16, #tpu.memory_space<vmem>>, vector<4x512xbf16>,
    %c16_i32_35 = arith.constant 16 : i32
    %70 = tpu.dynamic_rotate %62 by %c16_i32_35 dim 1 : vector<4x512xf32>, i32 -> vector<4x512xf32>
    %cst_36 = arith.constant 0.000000e+00 : f32
    %71 = vector.shape_cast %7 : vector<1x512xi1> to vector<1x512xi1>
    %72 = vector.broadcast %71 : vector<1x512xi1> to vector<4x512xi1>
    %73 = vector.broadcast %cst_36 : f32 to vector<4x512xf32>
    %74 = arith.select %72, %70, %73 : vector<4x512xi1>, vector<4x512xf32>
    %75 = arith.truncf %74 : vector<4x512xf32> to vector<4x512xbf16>
    %c16_37 = arith.constant 16 : index
    %c0_38 = arith.constant 0 : index
    %76 = vector.load %arg16[%c16_37, %c0_38] : memref<80x512xbf16, #tpu.memory_space<vmem>>, vector<4x512xbf16>
    tpu.vector_store %arg16[%c16_37, %c0_38], %75 {strides = array<i32>} : memref<80x512xbf16, #tpu.memory_space<vmem>>, vector<4x512xbf16>,
    %77 = arith.truncf %62 : vector<4x512xf32> to vector<4x512xbf16>
    %c32_39 = arith.constant 32 : index
    %c0_40 = arith.constant 0 : index
    %78 = vector.load %arg16[%c32_39, %c0_40] : memref<80x512xbf16, #tpu.memory_space<vmem>>, vector<4x512xbf16>
    tpu.vector_store %arg16[%c32_39, %c0_40], %77 {strides = array<i32>} : memref<80x512xbf16, #tpu.memory_space<vmem>>, vector<4x512xbf16>,
    %c496_i32_41 = arith.constant 496 : i32
    %79 = tpu.dynamic_rotate %62 by %c496_i32_41 dim 1 : vector<4x512xf32>, i32 -> vector<4x512xf32>
    %cst_42 = arith.constant 0.000000e+00 : f32
    %80 = vector.shape_cast %5 : vector<1x512xi1> to vector<1x512xi1>
    %81 = vector.broadcast %80 : vector<1x512xi1> to vector<4x512xi1>
    %82 = vector.broadcast %cst_42 : f32 to vector<4x512xf32>
    %83 = arith.select %81, %79, %82 : vector<4x512xi1>, vector<4x512xf32>
    %84 = arith.truncf %83 : vector<4x512xf32> to vector<4x512xbf16>
    %c48 = arith.constant 48 : index
    %c0_43 = arith.constant 0 : index
    %85 = vector.load %arg16[%c48, %c0_43] : memref<80x512xbf16, #tpu.memory_space<vmem>>, vector<4x512xbf16>
    tpu.vector_store %arg16[%c48, %c0_43], %84 {strides = array<i32>} : memref<80x512xbf16, #tpu.memory_space<vmem>>, vector<4x512xbf16>,
    %c480_i32 = arith.constant 480 : i32
    %86 = tpu.dynamic_rotate %62 by %c480_i32 dim 1 : vector<4x512xf32>, i32 -> vector<4x512xf32>
    %cst_44 = arith.constant 0.000000e+00 : f32
    %87 = vector.shape_cast %13 : vector<1x512xi1> to vector<1x512xi1>
    %88 = vector.broadcast %87 : vector<1x512xi1> to vector<4x512xi1>
    %89 = vector.broadcast %cst_44 : f32 to vector<4x512xf32>
    %90 = arith.select %88, %86, %89 : vector<4x512xi1>, vector<4x512xf32>
    %91 = arith.truncf %90 : vector<4x512xf32> to vector<4x512xbf16>
    %c64 = arith.constant 64 : index
    %c0_45 = arith.constant 0 : index
    %92 = vector.load %arg16[%c64, %c0_45] : memref<80x512xbf16, #tpu.memory_space<vmem>>, vector<4x512xbf16>
    tpu.vector_store %arg16[%c64, %c0_45], %91 {strides = array<i32>} : memref<80x512xbf16, #tpu.memory_space<vmem>>, vector<4x512xbf16>,
    %c0_46 = arith.constant 0 : index
    %c0_47 = arith.constant 0 : index
    %93 = vector.load %arg6[%c0_46, %c0_47] : memref<8x80xbf16, #tpu.memory_space<vmem>>, vector<8x80xbf16>
    %c0_48 = arith.constant 0 : index
    %c0_49 = arith.constant 0 : index
    %94 = vector.load %arg16[%c0_48, %c0_49] : memref<80x512xbf16, #tpu.memory_space<vmem>>, vector<80x512xbf16>
    %cst_50 = arith.constant dense<0.000000e+00> : vector<8x512xf32>
    %95 = tpu.matmul %93, %94, %cst_50 {dimension_numbers = #tpu.dot_dimension_numbers<[1], [0], [0], [1], [0, 0, 1, 1], [], []>} : vector<8x80xbf16>, vector<80x512xbf16>, vector<8x512xf32> -> vector<8x512xf32>
    %cst_51 = arith.constant dense<0.000000e+00> : vector<8xf32>
    %96 = vector.multi_reduction <add>, %95, %cst_51 [1] : vector<8x512xf32> to vector<8xf32>
    %97 = vector.shape_cast %96 : vector<8xf32> to vector<8x1xf32>
    %cst_52 = arith.constant 5.120000e+02 : f32
    %98 = vector.broadcast %cst_52 : f32 to vector<8x1xf32>
    %99 = arith.divf %97, %98 : vector<8x1xf32>
    %100 = vector.broadcast %99 : vector<8x1xf32> to vector<8x512xf32>
    %101 = arith.subf %95, %100 : vector<8x512xf32>
    %102 = arith.mulf %101, %101 : vector<8x512xf32>
    %cst_53 = arith.constant dense<0.000000e+00> : vector<8xf32>
    %103 = vector.multi_reduction <add>, %102, %cst_53 [1] : vector<8x512xf32> to vector<8xf32>
    %104 = vector.shape_cast %103 : vector<8xf32> to vector<8x1xf32>
    %cst_54 = arith.constant 5.120000e+02 : f32
    %105 = vector.broadcast %cst_54 : f32 to vector<8x1xf32>
    %106 = arith.divf %104, %105 : vector<8x1xf32>
    %c0_55 = arith.constant 0 : index
    %c0_56 = arith.constant 0 : index
    %107 = vector.load %arg7[%c0_55, %c0_56] : memref<8x1xf32, #tpu.memory_space<vmem>>, vector<8x1xf32>
    %cst_57 = arith.constant 1.000000e-03 : f32
    %108 = vector.broadcast %cst_57 : f32 to vector<8x1xf32>
    %109 = arith.addf %106, %108 : vector<8x1xf32>
    %110 = math.rsqrt %109 : vector<8x1xf32>
    %111 = arith.mulf %107, %110 : vector<8x1xf32>
    %112 = vector.broadcast %111 : vector<8x1xf32> to vector<8x512xf32>
    %113 = arith.mulf %101, %112 : vector<8x512xf32>
    %c0_58 = arith.constant 0 : index
    %c0_59 = arith.constant 0 : index
    %114 = vector.load %arg8[%c0_58, %c0_59] : memref<8x1xf32, #tpu.memory_space<vmem>>, vector<8x1xf32>
    %115 = vector.broadcast %114 : vector<8x1xf32> to vector<8x512xf32>
    %116 = arith.addf %113, %115 : vector<8x512xf32>
    %cst_60 = arith.constant 0.000000e+00 : f32
    %117 = vector.broadcast %cst_60 : f32 to vector<8x512xf32>
    %118 = arith.maximumf %116, %117 : vector<8x512xf32>
    %c1_i32_61 = arith.constant 1 : i32
    %119 = tpu.dynamic_rotate %118 by %c1_i32_61 dim 1 : vector<8x512xf32>, i32 -> vector<8x512xf32>
    %cst_62 = arith.constant 0.000000e+00 : f32
    %120 = vector.shape_cast %11 : vector<1x512xi1> to vector<1x512xi1>
    %121 = vector.broadcast %120 : vector<1x512xi1> to vector<8x512xi1>
    %122 = vector.broadcast %cst_62 : f32 to vector<8x512xf32>
    %123 = arith.select %121, %119, %122 : vector<8x512xi1>, vector<8x512xf32>
    %124 = arith.truncf %123 : vector<8x512xf32> to vector<8x512xbf16>
    %c0_63 = arith.constant 0 : index
    %c0_64 = arith.constant 0 : index
    %125 = vector.load %arg16[%c0_63, %c0_64] : memref<80x512xbf16, #tpu.memory_space<vmem>>, vector<8x512xbf16>
    tpu.vector_store %arg16[%c0_63, %c0_64], %124 {strides = array<i32>} : memref<80x512xbf16, #tpu.memory_space<vmem>>, vector<8x512xbf16>,
    %126 = arith.truncf %118 : vector<8x512xf32> to vector<8x512xbf16>
    %c16_65 = arith.constant 16 : index
    %c0_66 = arith.constant 0 : index
    %127 = vector.load %arg16[%c16_65, %c0_66] : memref<80x512xbf16, #tpu.memory_space<vmem>>, vector<8x512xbf16>
    tpu.vector_store %arg16[%c16_65, %c0_66], %126 {strides = array<i32>} : memref<80x512xbf16, #tpu.memory_space<vmem>>, vector<8x512xbf16>,
    %c511_i32 = arith.constant 511 : i32
    %128 = tpu.dynamic_rotate %118 by %c511_i32 dim 1 : vector<8x512xf32>, i32 -> vector<8x512xf32>
    %cst_67 = arith.constant 0.000000e+00 : f32
    %129 = vector.shape_cast %9 : vector<1x512xi1> to vector<1x512xi1>
    %130 = vector.broadcast %129 : vector<1x512xi1> to vector<8x512xi1>
    %131 = vector.broadcast %cst_67 : f32 to vector<8x512xf32>
    %132 = arith.select %130, %128, %131 : vector<8x512xi1>, vector<8x512xf32>
    %133 = arith.truncf %132 : vector<8x512xf32> to vector<8x512xbf16>
    %c32_68 = arith.constant 32 : index
    %c0_69 = arith.constant 0 : index
    %134 = vector.load %arg16[%c32_68, %c0_69] : memref<80x512xbf16, #tpu.memory_space<vmem>>, vector<8x512xbf16>
    tpu.vector_store %arg16[%c32_68, %c0_69], %133 {strides = array<i32>} : memref<80x512xbf16, #tpu.memory_space<vmem>>, vector<8x512xbf16>,
    %c0_70 = arith.constant 0 : index
    %c0_71 = arith.constant 0 : index
    %135 = vector.load %arg9[%c0_70, %c0_71] : memref<8x48xbf16, #tpu.memory_space<vmem>>, vector<8x48xbf16>
    %c0_72 = arith.constant 0 : index
    %c0_73 = arith.constant 0 : index
    %136 = vector.load %arg16[%c0_72, %c0_73] : memref<80x512xbf16, #tpu.memory_space<vmem>>, vector<48x512xbf16>
    %cst_74 = arith.constant dense<0.000000e+00> : vector<8x512xf32>
    %137 = tpu.matmul %135, %136, %cst_74 {dimension_numbers = #tpu.dot_dimension_numbers<[1], [0], [0], [1], [0, 0, 1, 1], [], []>} : vector<8x48xbf16>, vector<48x512xbf16>, vector<8x512xf32> -> vector<8x512xf32>
    %cst_75 = arith.constant dense<0.000000e+00> : vector<8xf32>
    %138 = vector.multi_reduction <add>, %137, %cst_75 [1] : vector<8x512xf32> to vector<8xf32>
    %139 = vector.shape_cast %138 : vector<8xf32> to vector<8x1xf32>
    %cst_76 = arith.constant 5.120000e+02 : f32
    %140 = vector.broadcast %cst_76 : f32 to vector<8x1xf32>
    %141 = arith.divf %139, %140 : vector<8x1xf32>
    %142 = vector.broadcast %141 : vector<8x1xf32> to vector<8x512xf32>
    %143 = arith.subf %137, %142 : vector<8x512xf32>
    %144 = arith.mulf %143, %143 : vector<8x512xf32>
    %cst_77 = arith.constant dense<0.000000e+00> : vector<8xf32>
    %145 = vector.multi_reduction <add>, %144, %cst_77 [1] : vector<8x512xf32> to vector<8xf32>
    %146 = vector.shape_cast %145 : vector<8xf32> to vector<8x1xf32>
    %cst_78 = arith.constant 5.120000e+02 : f32
    %147 = vector.broadcast %cst_78 : f32 to vector<8x1xf32>
    %148 = arith.divf %146, %147 : vector<8x1xf32>
    %c0_79 = arith.constant 0 : index
    %c0_80 = arith.constant 0 : index
    %149 = vector.load %arg10[%c0_79, %c0_80] : memref<8x1xf32, #tpu.memory_space<vmem>>, vector<8x1xf32>
    %cst_81 = arith.constant 1.000000e-03 : f32
    %150 = vector.broadcast %cst_81 : f32 to vector<8x1xf32>
    %151 = arith.addf %148, %150 : vector<8x1xf32>
    %152 = math.rsqrt %151 : vector<8x1xf32>
    %153 = arith.mulf %149, %152 : vector<8x1xf32>
    %154 = vector.broadcast %153 : vector<8x1xf32> to vector<8x512xf32>
    %155 = arith.mulf %143, %154 : vector<8x512xf32>
    %c0_82 = arith.constant 0 : index
    %c0_83 = arith.constant 0 : index
    %156 = vector.load %arg11[%c0_82, %c0_83] : memref<8x1xf32, #tpu.memory_space<vmem>>, vector<8x1xf32>
    %157 = vector.broadcast %156 : vector<8x1xf32> to vector<8x512xf32>
    %158 = arith.addf %155, %157 : vector<8x512xf32>
    %cst_84 = arith.constant 0.000000e+00 : f32
    %159 = vector.broadcast %cst_84 : f32 to vector<8x512xf32>
    %160 = arith.maximumf %158, %159 : vector<8x512xf32>
    %c2_i32_85 = arith.constant 2 : i32
    %161 = tpu.dynamic_rotate %160 by %c2_i32_85 dim 1 : vector<8x512xf32>, i32 -> vector<8x512xf32>
    %cst_86 = arith.constant 0.000000e+00 : f32
    %162 = vector.shape_cast %19 : vector<1x512xi1> to vector<1x512xi1>
    %163 = vector.broadcast %162 : vector<1x512xi1> to vector<8x512xi1>
    %164 = vector.broadcast %cst_86 : f32 to vector<8x512xf32>
    %165 = arith.select %163, %161, %164 : vector<8x512xi1>, vector<8x512xf32>
    %166 = arith.truncf %165 : vector<8x512xf32> to vector<8x512xbf16>
    %c0_87 = arith.constant 0 : index
    %c0_88 = arith.constant 0 : index
    %167 = vector.load %arg16[%c0_87, %c0_88] : memref<80x512xbf16, #tpu.memory_space<vmem>>, vector<8x512xbf16>
    tpu.vector_store %arg16[%c0_87, %c0_88], %166 {strides = array<i32>} : memref<80x512xbf16, #tpu.memory_space<vmem>>, vector<8x512xbf16>,
    %c1_i32_89 = arith.constant 1 : i32
    %168 = tpu.dynamic_rotate %160 by %c1_i32_89 dim 1 : vector<8x512xf32>, i32 -> vector<8x512xf32>
    %cst_90 = arith.constant 0.000000e+00 : f32
    %169 = vector.shape_cast %11 : vector<1x512xi1> to vector<1x512xi1>
    %170 = vector.broadcast %169 : vector<1x512xi1> to vector<8x512xi1>
    %171 = vector.broadcast %cst_90 : f32 to vector<8x512xf32>
    %172 = arith.select %170, %168, %171 : vector<8x512xi1>, vector<8x512xf32>
    %173 = arith.truncf %172 : vector<8x512xf32> to vector<8x512xbf16>
    %c16_91 = arith.constant 16 : index
    %c0_92 = arith.constant 0 : index
    %174 = vector.load %arg16[%c16_91, %c0_92] : memref<80x512xbf16, #tpu.memory_space<vmem>>, vector<8x512xbf16>
    tpu.vector_store %arg16[%c16_91, %c0_92], %173 {strides = array<i32>} : memref<80x512xbf16, #tpu.memory_space<vmem>>, vector<8x512xbf16>,
    %175 = arith.truncf %160 : vector<8x512xf32> to vector<8x512xbf16>
    %c32_93 = arith.constant 32 : index
    %c0_94 = arith.constant 0 : index
    %176 = vector.load %arg16[%c32_93, %c0_94] : memref<80x512xbf16, #tpu.memory_space<vmem>>, vector<8x512xbf16>
    tpu.vector_store %arg16[%c32_93, %c0_94], %175 {strides = array<i32>} : memref<80x512xbf16, #tpu.memory_space<vmem>>, vector<8x512xbf16>,
    %c511_i32_95 = arith.constant 511 : i32
    %177 = tpu.dynamic_rotate %160 by %c511_i32_95 dim 1 : vector<8x512xf32>, i32 -> vector<8x512xf32>
    %cst_96 = arith.constant 0.000000e+00 : f32
    %178 = vector.shape_cast %9 : vector<1x512xi1> to vector<1x512xi1>
    %179 = vector.broadcast %178 : vector<1x512xi1> to vector<8x512xi1>
    %180 = vector.broadcast %cst_96 : f32 to vector<8x512xf32>
    %181 = arith.select %179, %177, %180 : vector<8x512xi1>, vector<8x512xf32>
    %182 = arith.truncf %181 : vector<8x512xf32> to vector<8x512xbf16>
    %c48_97 = arith.constant 48 : index
    %c0_98 = arith.constant 0 : index
    %183 = vector.load %arg16[%c48_97, %c0_98] : memref<80x512xbf16, #tpu.memory_space<vmem>>, vector<8x512xbf16>
    tpu.vector_store %arg16[%c48_97, %c0_98], %182 {strides = array<i32>} : memref<80x512xbf16, #tpu.memory_space<vmem>>, vector<8x512xbf16>,
    %c510_i32 = arith.constant 510 : i32
    %184 = tpu.dynamic_rotate %160 by %c510_i32 dim 1 : vector<8x512xf32>, i32 -> vector<8x512xf32>
    %cst_99 = arith.constant 0.000000e+00 : f32
    %185 = vector.shape_cast %17 : vector<1x512xi1> to vector<1x512xi1>
    %186 = vector.broadcast %185 : vector<1x512xi1> to vector<8x512xi1>
    %187 = vector.broadcast %cst_99 : f32 to vector<8x512xf32>
    %188 = arith.select %186, %184, %187 : vector<8x512xi1>, vector<8x512xf32>
    %189 = arith.truncf %188 : vector<8x512xf32> to vector<8x512xbf16>
    %c64_100 = arith.constant 64 : index
    %c0_101 = arith.constant 0 : index
    %190 = vector.load %arg16[%c64_100, %c0_101] : memref<80x512xbf16, #tpu.memory_space<vmem>>, vector<8x512xbf16>
    tpu.vector_store %arg16[%c64_100, %c0_101], %189 {strides = array<i32>} : memref<80x512xbf16, #tpu.memory_space<vmem>>, vector<8x512xbf16>,
    %c0_102 = arith.constant 0 : index
    %c0_103 = arith.constant 0 : index
    %191 = vector.load %arg12[%c0_102, %c0_103] : memref<8x80xbf16, #tpu.memory_space<vmem>>, vector<8x80xbf16>
    %c0_104 = arith.constant 0 : index
    %c0_105 = arith.constant 0 : index
    %192 = vector.load %arg16[%c0_104, %c0_105] : memref<80x512xbf16, #tpu.memory_space<vmem>>, vector<80x512xbf16>
    %cst_106 = arith.constant dense<0.000000e+00> : vector<8x512xf32>
    %193 = tpu.matmul %191, %192, %cst_106 {dimension_numbers = #tpu.dot_dimension_numbers<[1], [0], [0], [1], [0, 0, 1, 1], [], []>} : vector<8x80xbf16>, vector<80x512xbf16>, vector<8x512xf32> -> vector<8x512xf32>
    %cst_107 = arith.constant dense<0.000000e+00> : vector<8xf32>
    %194 = vector.multi_reduction <add>, %193, %cst_107 [1] : vector<8x512xf32> to vector<8xf32>
    %195 = vector.shape_cast %194 : vector<8xf32> to vector<8x1xf32>
    %cst_108 = arith.constant 5.120000e+02 : f32
    %196 = vector.broadcast %cst_108 : f32 to vector<8x1xf32>
    %197 = arith.divf %195, %196 : vector<8x1xf32>
    %198 = vector.broadcast %197 : vector<8x1xf32> to vector<8x512xf32>
    %199 = arith.subf %193, %198 : vector<8x512xf32>
    %200 = arith.mulf %199, %199 : vector<8x512xf32>
    %cst_109 = arith.constant dense<0.000000e+00> : vector<8xf32>
    %201 = vector.multi_reduction <add>, %200, %cst_109 [1] : vector<8x512xf32> to vector<8xf32>
    %202 = vector.shape_cast %201 : vector<8xf32> to vector<8x1xf32>
    %cst_110 = arith.constant 5.120000e+02 : f32
    %203 = vector.broadcast %cst_110 : f32 to vector<8x1xf32>
    %204 = arith.divf %202, %203 : vector<8x1xf32>
    %c0_111 = arith.constant 0 : index
    %c0_112 = arith.constant 0 : index
    %205 = vector.load %arg13[%c0_111, %c0_112] : memref<8x1xf32, #tpu.memory_space<vmem>>, vector<8x1xf32>
    %cst_113 = arith.constant 1.000000e-03 : f32
    %206 = vector.broadcast %cst_113 : f32 to vector<8x1xf32>
    %207 = arith.addf %204, %206 : vector<8x1xf32>
    %208 = math.rsqrt %207 : vector<8x1xf32>
    %209 = arith.mulf %205, %208 : vector<8x1xf32>
    %210 = vector.broadcast %209 : vector<8x1xf32> to vector<8x512xf32>
    %211 = arith.mulf %199, %210 : vector<8x512xf32>
    %c0_114 = arith.constant 0 : index
    %c0_115 = arith.constant 0 : index
    %212 = vector.load %arg14[%c0_114, %c0_115] : memref<8x1xf32, #tpu.memory_space<vmem>>, vector<8x1xf32>
    %213 = vector.broadcast %212 : vector<8x1xf32> to vector<8x512xf32>
    %214 = arith.addf %211, %213 : vector<8x512xf32>
    %cst_116 = arith.constant 0.000000e+00 : f32
    %215 = vector.broadcast %cst_116 : f32 to vector<8x512xf32>
    %216 = arith.maximumf %214, %215 : vector<8x512xf32>
    %c0_117 = arith.constant 0 : index
    %c0_118 = arith.constant 0 : index
    %217 = vector.load %arg15[%c0_117, %c0_118] : memref<8x512xf32, #tpu.memory_space<vmem>>, vector<8x512xf32>
    tpu.vector_store %arg15[%c0_117, %c0_118], %216 {strides = array<i32>} : memref<8x512xf32, #tpu.memory_space<vmem>>, vector<8x512xf32>,
    return
  }
}

</mosaic_0001>

<bundles_post_ra>
// kernel: audio_block_forward.1
= control target key start
LH: loop header
LB: loop body
LE: loop exit
PB: predicated region body
PF: predicated region fallthrough
CT: control target
= control target key end

     0   :  { %v1322_v0 = vmov 0   ;;  %s1323_s22 = smov 16   ;;  %v97_v11 = vlaneseq  ;;  %vm1889_vm12 = vcmask 392192   ;;  %vm290_vm13 = vcmask 1043456   ;;  %s1328_s18 = smov 127   ;;  %s1873_s2 = inlined_call_operand.vmem [shape: f32[4,512], index: 2, kind: input, shape index: {}]   ;;  %s1874_s0 = inlined_call_operand.vmem [shape: s32[1,512], index: 0, kind: input, shape index: {}]   ;;  %s1875_s3 = inlined_call_operand.vmem [shape: bf16[4,48], index: 3, kind: input, shape index: {}]   ;;  %s1876_s5 = inlined_call_operand.vmem [shape: f32[4,1], index: 5, kind: input, shape index: {}]   ;;  %s1877_s4 = inlined_call_operand.vmem [shape: f32[4,1], index: 4, kind: input, shape index: {}]   ;;  %s1878_s6 = inlined_call_operand.vmem [shape: bf16[8,80], index: 6, kind: input, shape index: {}]   ;;  %s1879_s8 = inlined_call_operand.vmem [shape: f32[8,1], index: 8, kind: input, shape index: {}]   ;;  %s1880_s7 = inlined_call_operand.vmem [shape: f32[8,1], index: 7, kind: input, shape index: {}]   ;;  %s1881_s1 = inlined_call_operand.vmem [shape: s32[1,512], index: 1, kind: input, shape index: {}]   ;;  %s1882_s9 = inlined_call_operand.vmem [shape: bf16[8,48], index: 9, kind: input, shape index: {}]   ;;  %s1883_s11 = inlined_call_operand.vmem [shape: f32[8,1], index: 11, kind: input, shape index: {}]   ;;  %s1884_s10 = inlined_call_operand.vmem [shape: f32[8,1], index: 10, kind: input, shape index: {}]   ;;  %s1885_s12 = inlined_call_operand.vmem [shape: bf16[8,80], index: 12, kind: input, shape index: {}]   ;;  %s1886_s14 = inlined_call_operand.vmem [shape: f32[8,1], index: 14, kind: input, shape index: {}]   ;;  %s1887_s13 = inlined_call_operand.vmem [shape: f32[8,1], index: 13, kind: input, shape index: {}]   ;;  %s1888_s15 = inlined_call_operand.vmem [shape: f32[8,512], index: 15, kind: output, shape index: {}]  }
   0x1   :  { %55 = vst [vmem:[#allocation2 + $0x20] sm:$0xff] %v1322_v0  ;;  %56 = vst [vmem:[#allocation2 + $0x28] sm:$0xff] %v1322_v0  ;;  %v81_v1 = vld [vmem:[%s1873_s2] sm:$0xff]  ;;  %v82_v2 = vld [vmem:[%s1873_s2 + $0x8] sm:$0xff]  ;;  %240 = vmatprep.mubr.bf16.mxu0 %v1322_v0  ;;  %281 = vmatprep.mubr.bf16.mxu1 %v1322_v0  ;;  %s1324_s2 = smov 112   ;;  %s1330_s23 = smov 126  }
   0x2   :  { %51 = vst [vmem:[#allocation2] sm:$0xff] %v1322_v0  ;;  %52 = vst [vmem:[#allocation2 + $0x8] sm:$0xff] %v1322_v0  ;;  %v85_v3 = vcombine.high %v81_v1, %v81_v1  ;;  %v137_v4 = vpack.c.bf16 %v81_v1, %v81_v1  ;;  %93 = vrot.lane.b32.xlu1 %v82_v2, %s1323_s22  ;;  %v139_v5 = vpack.c.bf16 %v82_v2, %v82_v2  ;;  %v1450_v12 = vld [vmem:[%s1874_s0] sm:$0xf] }
   0x3   :  { %53 = vst [vmem:[#allocation2 + $0x10] sm:$0xff] %v1322_v0  ;;  %54 = vst [vmem:[#allocation2 + $0x18] sm:$0xff] %v1322_v0  ;;  %v86_v6 = vcombine.high %v82_v2, %v82_v2  ;;  %1230 = vset.pattern.permute.xlu0 %v1322_v0  ;;  %1231 = vset.pattern.permute.xlu1 %v1322_v0  ;;  %v106_v13 = vshrl.u32 %v97_v11, 7  ;;  %vm74_vm0 = vcmp.ge.s32.totalorder %v1450_v12, 1  ;;  %vm73_vm1 = vcmp.lt.s32.totalorder %v1450_v12, 15 }
   0x4   :  { %57 = vst [vmem:[#allocation2 + $0x30] sm:$0xff] %v1322_v0  ;;  %58 = vst [vmem:[#allocation2 + $0x38] sm:$0xff] %v1322_v0  ;;  %v1220_v7 = vpack.i.bf16 %v85_v3, %v81_v1  ;;  %v138_v8 = vpack.c.bf16 %v85_v3, %v85_v3  ;;  %v1225_v10 = vpack.i.bf16 %v82_v2, %v85_v3  ;;  %v104_v16 = vsel %vm74_vm0, 1, %v1322_v0 }
   0x5   :  { %59 = vst [vmem:[#allocation2 + $0x40] sm:$0xff] %v1322_v0  ;;  %60 = vst [vmem:[#allocation2 + $0x48] sm:$0xff] %v1322_v0  ;;  %v140_v9 = vpack.c.bf16 %v86_v6, %v86_v6  ;;  %v1454_v14 = vsub.s32 1, %v106_v13  ;;  %v1456_v15 = vsub.s32 2, %v106_v13  ;;  %v158_v17 = vsel %vm73_vm1, 1, %v1322_v0 }
   0x6   :  { %61 = vst [vmem:[#allocation2 + $0x50] sm:$0xff] %v1322_v0  ;;  %62 = vst [vmem:[#allocation2 + $0x58] sm:$0xff] %v1322_v0  ;;  %1221 = vrot.lane.b32.xlu0 %v1220_v7, %s1323_s22  ;;  %1226 = vrot.lane.b32.xlu1 %v1225_v10, %s1324_s2  ;;  %v1460_v18 = vsub.s32 0, %v106_v13  ;;  %v1462_v19 = vand.u32 127, %v97_v11  ;;  %v1464_v20 = vsub.s32 3, %v106_v13  ;;  %vm78_vm14 = vcmp.ge.s32.totalorder %v1450_v12, 2 }
   0x7   :  { %63 = vst [vmem:[#allocation2 + $0x60] sm:$0xff] %v1322_v0  ;;  %64 = vst [vmem:[#allocation2 + $0x68] sm:$0xff] %v1322_v0  ;;  %v112_v21 = vrot.slane %v104_v16, %v1454_v14  ;;  %v116_v23 = vrot.slane %v104_v16, %v1456_v15  ;;  %v166_v24 = vrot.slane %v158_v17, %v1454_v14  ;;  %vm77_vm15 = vcmp.lt.s32.totalorder %v1450_v12, 14 }
   0x8   :  { %65 = vst [vmem:[#allocation2 + $0x70] sm:$0xff] %v1322_v0  ;;  %66 = vst [vmem:[#allocation2 + $0x78] sm:$0xff] %v1322_v0  ;;  %v108_v25 = vrot.slane %v104_v16, %v1460_v18  ;;  %v170_v26 = vrot.slane %v158_v17, %v1456_v15  ;;  %vm1891_vm2 = vcmp.lt.s32.totalorder %v1462_v19, 16  ;;  %v120_v27 = vrot.slane %v104_v16, %v1464_v20 }
   0x9   :  { %67 = vst [vmem:[#allocation2 + $0x80] sm:$0xff] %v1322_v0  ;;  %68 = vst [vmem:[#allocation2 + $0x88] sm:$0xff] %v1322_v0  ;;  %vm1890_vm3 = vcmp.lt.s32.totalorder %v1462_v19, 112  ;;  %vm1474_vm4 = vcmp.eq.s32.totalorder %v112_v21, 1  ;;  %vm1478_vm5 = vcmp.eq.s32.totalorder %v116_v23, 1  ;;  %vm1482_vm6 = vcmp.eq.s32.totalorder %v166_v24, 1 }
   0xa   :  { %69 = vst [vmem:[#allocation2 + $0x90] sm:$0xff] %v1322_v0  ;;  %70 = vst [vmem:[#allocation2 + $0x98] sm:$0xff] %v1322_v0  ;;  %95 = vrot.lane.b32.xlu0 %v86_v6, %s1323_s22  ;;  %151 = vrot.lane.b32.xlu1 %v86_v6, %s1324_s2  ;;  %v162_v33 = vrot.slane %v158_v17, %v1460_v18  ;;  %vm1487_vm7 = vcmp.eq.s32.totalorder %v108_v25, 1  ;;  %vm1491_vm8 = vcmp.eq.s32.totalorder %v170_v26, 1  ;;  %vm1500_vm9 = vcmp.eq.s32.totalorder %v120_v27, 1 }
   0xb   :  { %141 = vst [vmem:[#allocation2 + $0x20] sm:$0x3] %v137_v4  ;;  %143 = vst [vmem:[#allocation2 + $0x30] sm:$0x3] %v139_v5  ;;  %v174_v40 = vrot.slane %v158_v17, %v1464_v20  ;;  %v191_v26 = vld [vmem:[%s1875_s3] sm:$0x3] }
   0xc   :  { %142 = vst [vmem:[#allocation2 + $0x28] sm:$0x3] %v138_v8  ;;  %144 = vst [vmem:[#allocation2 + $0x38] sm:$0x3] %v140_v9  ;;  %vm1512_vm10 = vcmp.eq.s32.totalorder %v162_v33, 1  ;;  %vm355_vm0 = vcmp.lt.s32.totalorder %v1462_v19, 32 }
   0xd   :  { %vm1528_vm11 = vcmp.eq.s32.totalorder %v174_v40, 1 }
   0xe   :  { %145 = vrot.lane.b32.xlu0 %v81_v1, %s1324_s2 }
  0x12   :  { %v196_v17 = vld [vmem:[#allocation2 + $0x20] sm:$0xff]  ;;  %v198_v21 = vld [vmem:[#allocation2 + $0x30] sm:$0xff] }
  0x13   :  { %v197_v9 = vld [vmem:[#allocation2 + $0x28] sm:$0xff]  ;;  %v199_v13 = vld [vmem:[#allocation2 + $0x38] sm:$0xff] }
  0x74   :  { %v94_v22 = vpop.permute.xlu1 %93 }
  0x78   :  { %v1222_v28 = vpop.permute.xlu0 %1221  ;;  %v1227_v31 = vpop.permute.xlu1 %1226 }
  0x79   :  { %v1224_v34 = vunpack.i.h.bf16 %v1222_v28  ;;  %v1223_v35 = vunpack.i.l.bf16 %v1222_v28  ;;  %v1229_v36 = vunpack.i.h.bf16 %v1227_v31  ;;  %v1228_v37 = vunpack.i.l.bf16 %v1227_v31 }
  0x7b   :  { %v102_v41 = vsel %vm1891_vm2, %v1223_v35, %v1224_v34  ;;  %v101_v42 = vsel %vm1891_vm2, %v1224_v34, %v94_v22  ;;  %v155_v44 = vsel %vm1890_vm3, %v1228_v37, %v1229_v36 }
  0x7c   :  { %v126_v45 = vsel %vm1474_vm4, %v102_v41, 0.0  ;;  %v127_v46 = vsel %vm1478_vm5, %v101_v42, 0.0  ;;  %v96_v47 = vpop.permute.xlu0 %95  ;;  %v180_v48 = vsel %vm1482_vm6, %v155_v44, 0.0  ;;  %v152_v49 = vpop.permute.xlu1 %151 }
  0x7d   :  { %v130_v51 = vpack.c.bf16 %v126_v45, %v126_v45  ;;  %v131_v52 = vpack.c.bf16 %v127_v46, %v127_v46  ;;  %v100_v53 = vsel %vm1891_vm2, %v94_v22, %v96_v47  ;;  %v103_v54 = vsel %vm1891_vm2, %v96_v47, %v1223_v35 }
  0x7e   :  { %v125_v55 = vsel %vm1487_vm7, %v103_v54, 0.0  ;;  %v128_v56 = vsel %vm1500_vm9, %v100_v53, 0.0  ;;  %v184_v57 = vpack.c.bf16 %v180_v48, %v180_v48  ;;  %v154_v58 = vsel %vm1890_vm3, %v1229_v36, %v152_v49 }
  0x7f   :  { %134 = vst [vmem:[#allocation2 + $0x8] sm:$0x3] %v130_v51  ;;  %135 = vst [vmem:[#allocation2 + $0x10] sm:$0x3] %v131_v52  ;;  %v129_v59 = vpack.c.bf16 %v125_v55, %v125_v55  ;;  %v132_v60 = vpack.c.bf16 %v128_v56, %v128_v56  ;;  %v181_v61 = vsel %vm1491_vm8, %v154_v58, 0.0 }
  0x80   :  { %188 = vst [vmem:[#allocation2 + $0x48] sm:$0x3] %v184_v57  ;;  %v185_v63 = vpack.c.bf16 %v181_v61, %v181_v61  ;;  %v146_v1 = vpop.permute.xlu0 %145 }
  0x81   :  { %133 = vst [vmem:[#allocation2] sm:$0x3] %v129_v59  ;;  %136 = vst [vmem:[#allocation2 + $0x18] sm:$0x3] %v132_v60  ;;  %v156_v2 = vsel %vm1890_vm3, %v146_v1, %v1228_v37  ;;  %v157_v3 = vsel %vm1890_vm3, %v152_v49, %v146_v1 }
  0x82   :  { %189 = vst [vmem:[#allocation2 + $0x50] sm:$0x3] %v185_v63  ;;  %v179_v4 = vsel %vm1512_vm10, %v156_v2, 0.0  ;;  %v182_v5 = vsel %vm1528_vm11, %v157_v3, 0.0 }
  0x83   :  { %v183_v6 = vpack.c.bf16 %v179_v4, %v179_v4  ;;  %v186_v7 = vpack.c.bf16 %v182_v5, %v182_v5  ;;  %v333_v4 = vld [vmem:[%s1876_s5] sm:$0xf]  ;;  %s1326_s5 = smov 32  }
  0x85   :  { %187 = vst [vmem:[#allocation2 + $0x40] sm:$0x3] %v183_v6  ;;  %190 = vst [vmem:[#allocation2 + $0x58] sm:$0x3] %v186_v7 }
  0x86   :  { %v193_v8 = vld [vmem:[#allocation2 + $0x8] sm:$0xff]  ;;  %v194_v16 = vld [vmem:[#allocation2 + $0x10] sm:$0xff] }
  0x87   :  { %208 = vmatprep.subr.bf16.mxu0 %v193_v8  ;;  %v201_v22 = vld [vmem:[#allocation2 + $0x48] sm:$0xff]  ;;  %v320_v8 = vld [vmem:[%s1877_s4] sm:$0xf]  ;;  %s1325_s4 = smov 96  }
  0x88   :  { %v192_v10 = vld [vmem:[#allocation2] sm:$0xff]  ;;  %v195_v11 = vld [vmem:[#allocation2 + $0x18] sm:$0xff] }
  0x89   :  { %209 = vmatpush1.bf16.msra.mxu0 %v192_v10  ;;  %249 = vmatprep.subr.bf16.mxu1 %v195_v11  ;;  %v202_v25 = vld [vmem:[#allocation2 + $0x50] sm:$0xff] }
  0x8a   :  { %250 = vmatpush1.bf16.msra.mxu1 %v194_v16  ;;  %210 = vmatprep.subr.bf16.mxu0 %v197_v9 }
  0x8b   :  { %251 = vmatprep.subr.bf16.mxu1 %v199_v13 }
  0x8c   :  { %v203_v23 = vld [vmem:[#allocation2 + $0x58] sm:$0xff]  ;;  %v200_v24 = vld [vmem:[#allocation2 + $0x40] sm:$0xff] }
  0x8d   :  { %211 = vmatpush1.bf16.msra.mxu0 %v196_v17 }
  0x8e   :  { %252 = vmatpush1.bf16.msra.mxu1 %v198_v21  ;;  %212 = vmatprep.subr.bf16.mxu0 %v201_v22 }
  0x8f   :  { %253 = vmatprep.subr.bf16.mxu1 %v203_v23 }
  0x91   :  { %213 = vmatpush1.bf16.msra.mxu0 %v200_v24 }
  0x92   :  { %254 = vmatpush1.bf16.msra.mxu1 %v202_v25 }
  0x94   :  { %1203 = vmatmul.mubr.msk.bf16.vlgmr.msra.gmra.mrb[0].mxu0 %vm1889_vm12, %v191_v26 }
  0x95   :  { %1204 = vmatmul.mubr.msk.bf16.vlgmr.msra.gmra.mrb[0].mxu1 %vm1889_vm12, %v191_v26  ;;  %552 = vmatprep.mubr.bf16.mxu0 %v1322_v0 }
  0x96   :  { %593 = vmatprep.mubr.bf16.mxu1 %v1322_v0 }
 0x167   :  { %v242_v27 = vpop.f32.mrb[0].mxu0 }
 0x168   :  { %v291_v28 = vsel %vm290_vm13, %v242_v27, 0.0  ;;  %v244_v31 = vpop.f32.mrb[1].mxu0  ;;  %v283_v33 = vpop.f32.mrb[0].mxu1 }
 0x169   :  { %v292_v34 = vsel %vm290_vm13, %v244_v31, 0.0  ;;  %v294_v35 = vsel %vm290_vm13, %v283_v33, 0.0  ;;  %v246_v36 = vpop.f32.mrb[2].mxu0  ;;  %v285_v37 = vpop.f32.mrb[1].mxu1 }
 0x16a   :  { %v293_v40 = vadd.f32 %v292_v34, %v291_v28  ;;  %v247_v41 = vpop.f32.mrb[3].mxu0  ;;  %v287_v42 = vpop.f32.mrb[2].mxu1  ;;  %v296_v46 = vsel %vm290_vm13, %v285_v37, 0.0 }
 0x16b   :  { %v288_v44 = vpop.f32.mrb[3].mxu1 }
 0x16c   :  { %v295_v45 = vadd.f32 %v294_v35, %v293_v40 }
 0x16e   :  { %v297_v47 = vadd.f32 %v296_v46, %v295_v45  ;;  %v360_v45 = vsel %vm78_vm14, 1, %v1322_v0  ;;  %v1569_v46 = vsel %vm77_vm15, 1, %v1322_v0 }
 0x16f   :  { %v372_v12 = vrot.slane %v360_v45, %v1456_v15  ;;  %v466_v38 = vrot.slane %v1569_v46, %v1460_v18 }
 0x170   :  { %298 = vadd.xlane.f32.xlu0 %v297_v47  ;;  %v368_v47 = vrot.slane %v360_v45, %v1454_v14 }
 0x171   :  { %vm1593_vm12 = vcmp.eq.s32.totalorder %v372_v12, 1 }
 0x172   :  { %vm378_vm1 = vcmp.eq.s32.totalorder %v368_v47, 1 }
 0x1fd   :  { %v299_v48 = vpop.xlane.xlu0 %298 }
 0x1fe   :  { %v301_v49 = vmul.f32 0.001953125, %v299_v48  ;;  %v470_v48 = vrot.slane %v1569_v46, %v1454_v14 }
 0x200   :  { %v302_v51 = vsub.f32 %v242_v27, %v301_v49  ;;  %v303_v52 = vsub.f32 %v244_v31, %v301_v49  ;;  %v304_v53 = vsub.f32 %v283_v33, %v301_v49  ;;  %v305_v54 = vsub.f32 %v285_v37, %v301_v49 }
 0x201   :  { %v474_v49 = vrot.slane %v1569_v46, %v1456_v15  ;;  %vm480_vm14 = vcmp.eq.s32.totalorder %v470_v48, 1 }
 0x202   :  { %v306_v55 = vmul.f32 %v302_v51, %v302_v51  ;;  %v307_v56 = vmul.f32 %v303_v52, %v303_v52  ;;  %v308_v57 = vmul.f32 %v304_v53, %v304_v53  ;;  %v309_v58 = vmul.f32 %v305_v54, %v305_v54 }
 0x203   :  { %vm481_vm15 = vcmp.eq.s32.totalorder %v474_v49, 1 }
 0x204   :  { %v310_v59 = vsel %vm290_vm13, %v306_v55, 0.0  ;;  %v311_v60 = vsel %vm290_vm13, %v307_v56, 0.0  ;;  %v313_v63 = vsel %vm290_vm13, %v308_v57, 0.0  ;;  %v315_v2 = vsel %vm290_vm13, %v309_v58, 0.0 }
 0x205   :  { %v312_v61 = vadd.f32 %v311_v60, %v310_v59  ;;  %vm457_vm13 = vcmp.lt.s32.totalorder %v1462_v19, 96  ;;  %v364_v57 = vrot.slane %v360_v45, %v1460_v18  ;;  %v376_v58 = vrot.slane %v360_v45, %v1464_v20 }
 0x207   :  { %v314_v1 = vadd.f32 %v313_v63, %v312_v61  ;;  %vm377_vm3 = vcmp.eq.s32.totalorder %v364_v57, 1  ;;  %vm380_vm2 = vcmp.eq.s32.totalorder %v376_v58, 1 }
 0x209   :  { %v316_v3 = vadd.f32 %v315_v2, %v314_v1 }
 0x20b   :  { %317 = vadd.xlane.f32.xlu1 %v316_v3 }
 0x21c   :  { %336 = vperm.xlu1 %1231, %v333_v4  }
 0x298   :  { %v318_v5 = vpop.xlane.xlu1 %317 }
 0x299   :  { %v319_v6 = vmul.f32 0.001953125, %v318_v5 }
 0x29b   :  { %v321_v7 = vadd.f32 0.001, %v319_v6 }
 0x29c   :  { %v337_v13 = vpop.permute.xlu1 %336 }
 0x29d   :  { %1314 = vrsqrt.f32 %v321_v7 }
 0x2a7   :  { %v1315_v9 = vpop.eup %1314 }
 0x2a8   :  { %v323_v10 = vmul.f32 %v1315_v9, %v320_v8 }
 0x2aa   :  { %326 = vperm.xlu0 %1230, %v323_v10  }
 0x329   :  { %v327_v11 = vpop.permute.xlu0 %326 }
 0x32a   :  { %v329_v16 = vmul.f32 %v327_v11, %v302_v51  ;;  %v330_v17 = vmul.f32 %v327_v11, %v303_v52  ;;  %v331_v21 = vmul.f32 %v327_v11, %v304_v53  ;;  %v332_v22 = vmul.f32 %v327_v11, %v305_v54 }
 0x32c   :  { %v339_v23 = vadd.f32 %v337_v13, %v329_v16  ;;  %v340_v24 = vadd.f32 %v337_v13, %v330_v17  ;;  %v341_v25 = vadd.f32 %v337_v13, %v331_v21  ;;  %v342_v26 = vadd.f32 %v337_v13, %v332_v22 }
 0x32e   :  { %v343_v27 = vmax.f32 %v339_v23, 0.0  ;;  %v344_v28 = vmax.f32 %v340_v24, 0.0  ;;  %v345_v31 = vmax.f32 %v341_v25, 0.0  ;;  %v346_v33 = vmax.f32 %v342_v26, 0.0 }
 0x330   :  { %v417_v34 = vpack.c.bf16 %v343_v27, %v343_v27  ;;  %v418_v35 = vpack.c.bf16 %v344_v28, %v344_v28  ;;  %v419_v36 = vpack.c.bf16 %v345_v31, %v345_v31  ;;  %v420_v37 = vpack.c.bf16 %v346_v33, %v346_v33 }
 0x331   :  { %v1262_v40 = vpack.i.bf16 %v345_v31, %v344_v28  ;;  %v1232_v41 = vpack.i.bf16 %v344_v28, %v343_v27  ;;  %v1237_v42 = vpack.i.bf16 %v345_v31, %v346_v33  ;;  %v1257_v44 = vpack.i.bf16 %v346_v33, %v343_v27 }
 0x332   :  { %421 = vst [vmem:[#allocation2 + $0x40] sm:$0x3] %v417_v34  ;;  %422 = vst [vmem:[#allocation2 + $0x48] sm:$0x3] %v418_v35 }
 0x333   :  { %423 = vst [vmem:[#allocation2 + $0x50] sm:$0x3] %v419_v36  ;;  %424 = vst [vmem:[#allocation2 + $0x58] sm:$0x3] %v420_v37  ;;  %1263 = vrot.lane.b32.xlu0 %v1262_v40, %s1325_s4  ;;  %1233 = vrot.lane.b32.xlu1 %v1232_v41, %s1326_s5 }
 0x337   :  { %455 = vrot.lane.b32.xlu0 %v346_v33, %s1325_s4  ;;  %1238 = vrot.lane.b32.xlu1 %v1237_v42, %s1326_s5 }
 0x33b   :  { %1243 = vrot.lane.b32.xlu1 %v1232_v41, %s1323_s22 }
 0x33f   :  { %1248 = vrot.lane.b32.xlu1 %v1237_v42, %s1323_s22 }
 0x343   :  { %1253 = vrot.lane.b32.xlu1 %v1262_v40, %s1324_s2 }
 0x347   :  { %1258 = vrot.lane.b32.xlu1 %v1257_v44, %s1324_s2 }
 0x34b   :  { %449 = vrot.lane.b32.xlu1 %v343_v27, %s1325_s4 }
 0x3a5   :  { %v1577_v51 = vpop.permute.xlu0 %1263  ;;  %v1234_v52 = vpop.permute.xlu1 %1233 }
 0x3a6   :  { %v1266_v53 = vunpack.i.h.bf16 %v1577_v51  ;;  %v1265_v54 = vunpack.i.l.bf16 %v1577_v51  ;;  %v1236_v55 = vunpack.i.h.bf16 %v1234_v52  ;;  %v1235_v56 = vunpack.i.l.bf16 %v1234_v52 }
 0x3a8   :  { %v358_v59 = vsel %vm355_vm0, %v1235_v56, %v1236_v55  ;;  %v459_v60 = vsel %vm457_vm13, %v1265_v54, %v1266_v53 }
 0x3a9   :  { %v382_v61 = vsel %vm378_vm1, %v358_v59, 0.0  ;;  %v1591_v63 = vpop.permute.xlu0 %455  ;;  %v484_v1 = vsel %vm480_vm14, %v459_v60, 0.0  ;;  %v1239_v3 = vpop.permute.xlu1 %1238  ;;  %vm1912_vm1 = vcmp.lt.s32.totalorder %v1462_v19, 16  ;;  %v478_v59 = vrot.slane %v1569_v46, %v1464_v20 }
 0x3aa   :  { %v386_v4 = vpack.c.bf16 %v382_v61, %v382_v61  ;;  %v458_v5 = vsel %vm457_vm13, %v1266_v53, %v1591_v63  ;;  %v488_v6 = vpack.c.bf16 %v484_v1, %v484_v1  ;;  %v1241_v7 = vunpack.i.h.bf16 %v1239_v3 }
 0x3ab   :  { %v485_v8 = vsel %vm481_vm15, %v458_v5, 0.0  ;;  %v1240_v9 = vunpack.i.l.bf16 %v1239_v3 }
 0x3ac   :  { %390 = vst [vmem:[#allocation2 + $0x8] sm:$0x3] %v386_v4  ;;  %v489_v10 = vpack.c.bf16 %v485_v8, %v485_v8  ;;  %492 = vst [vmem:[#allocation2 + $0x88] sm:$0x3] %v488_v6  ;;  %v357_v11 = vsel %vm355_vm0, %v1236_v55, %v1241_v7 }
 0x3ad   :  { %v356_v13 = vsel %vm355_vm0, %v1241_v7, %v1240_v9  ;;  %v359_v16 = vsel %vm355_vm0, %v1240_v9, %v1235_v56  ;;  %v383_v17 = vsel %vm1593_vm12, %v357_v11, 0.0  ;;  %v1244_v21 = vpop.permute.xlu1 %1243  ;;  %vm1915_vm12 = vmmov %vm1912_vm1  ;;  %vm479_vm0 = vcmp.eq.s32.totalorder %v466_v38, 1 }
 0x3ae   :  { %493 = vst [vmem:[#allocation2 + $0x90] sm:$0x3] %v489_v10  ;;  %v381_v22 = vsel %vm377_vm3, %v359_v16, 0.0  ;;  %v384_v23 = vsel %vm380_vm2, %v356_v13, 0.0  ;;  %v387_v24 = vpack.c.bf16 %v383_v17, %v383_v17  ;;  %v1246_v25 = vunpack.i.h.bf16 %v1244_v21  ;;  %vm1913_vm2 = vmmov %vm1912_vm1 }
 0x3af   :  { %v385_v26 = vpack.c.bf16 %v381_v22, %v381_v22  ;;  %v388_v27 = vpack.c.bf16 %v384_v23, %v384_v23  ;;  %v1245_v28 = vunpack.i.l.bf16 %v1244_v21  ;;  %vm1914_vm3 = vmmov %vm1912_vm1  ;;  %v505_v23 = vld [vmem:[#allocation2 + $0x48] sm:$0xff] }
 0x3b0   :  { %391 = vst [vmem:[#allocation2 + $0x10] sm:$0x3] %v387_v24 }
 0x3b1   :  { %389 = vst [vmem:[#allocation2] sm:$0x3] %v385_v26  ;;  %392 = vst [vmem:[#allocation2 + $0x18] sm:$0x3] %v388_v27  ;;  %v403_v31 = vsel %vm1912_vm1, %v1245_v28, %v1246_v25  ;;  %v1249_v33 = vpop.permute.xlu1 %1248  ;;  %vm1893_vm1 = vcmp.lt.s32.totalorder %v1462_v19, 127 }
 0x3b2   :  { %v406_v34 = vsel %vm1474_vm4, %v403_v31, 0.0  ;;  %v1251_v35 = vunpack.i.h.bf16 %v1249_v33  ;;  %v1250_v36 = vunpack.i.l.bf16 %v1249_v33  ;;  %vm1916_vm4 = vcmp.lt.s32.totalorder %v1462_v19, 112 }
 0x3b3   :  { %v410_v37 = vpack.c.bf16 %v406_v34, %v406_v34  ;;  %v497_v40 = vld [vmem:[#allocation2 + $0x8] sm:$0xff] }
 0x3b4   :  { %v401_v41 = vsel %vm1913_vm2, %v1251_v35, %v1250_v36  ;;  %v402_v42 = vsel %vm1914_vm3, %v1246_v25, %v1251_v35  ;;  %v404_v44 = vsel %vm1915_vm12, %v1250_v36, %v1245_v28  ;;  %520 = vmatprep.subr.bf16.mxu0 %v497_v40  ;;  %v506_v25 = vld [vmem:[#allocation2 + $0x50] sm:$0xff]  ;;  %v513_v31 = vld [vmem:[#allocation2 + $0x88] sm:$0xff]  ;;  %v495_v36 = vld [vmem:[%s1878_s6] sm:$0xf] }
 0x3b5   :  { %414 = vst [vmem:[#allocation2 + $0x28] sm:$0x3] %v410_v37  ;;  %v405_v45 = vsel %vm1487_vm7, %v404_v44, 0.0  ;;  %v407_v29 = vsel %vm1478_vm5, %v402_v42, 0.0  ;;  %v408_v47 = vsel %vm1500_vm9, %v401_v41, 0.0  ;;  %v1254_v48 = vpop.permute.xlu1 %1253  ;;  %vm1917_vm5 = vmmov %vm1916_vm4  ;;  %v514_v35 = vld [vmem:[#allocation2 + $0x90] sm:$0xff] }
 0x3b6   :  { %v409_v49 = vpack.c.bf16 %v405_v45, %v405_v45  ;;  %v411_v52 = vpack.c.bf16 %v407_v29, %v407_v29  ;;  %v412_v12 = vpack.c.bf16 %v408_v47, %v408_v47  ;;  %v1256_v53 = vunpack.i.h.bf16 %v1254_v48  ;;  %vm1918_vm7 = vmmov %vm1916_vm4 }
 0x3b7   :  { %v1255_v55 = vunpack.i.l.bf16 %v1254_v48  ;;  %v498_v56 = vld [vmem:[#allocation2 + $0x10] sm:$0xff]  ;;  %vm1919_vm9 = vmmov %vm1916_vm4 }
 0x3b8   :  { %413 = vst [vmem:[#allocation2 + $0x20] sm:$0x3] %v409_v49  ;;  %415 = vst [vmem:[#allocation2 + $0x30] sm:$0x3] %v411_v52  ;;  %v496_v57 = vld [vmem:[#allocation2] sm:$0xff]  ;;  %v499_v58 = vld [vmem:[#allocation2 + $0x18] sm:$0xff] }
 0x3b9   :  { %416 = vst [vmem:[#allocation2 + $0x38] sm:$0x3] %v412_v12  ;;  %v434_v30 = vsel %vm1916_vm4, %v1255_v55, %v1256_v53  ;;  %521 = vmatpush1.bf16.msra.mxu0 %v496_v57  ;;  %561 = vmatprep.subr.bf16.mxu1 %v499_v58  ;;  %v1259_v43 = vpop.permute.xlu1 %1258  ;;  %v635_v12 = vld [vmem:[%s1879_s8] sm:$0xff] }
 0x3ba   :  { %v438_v60 = vsel %vm1482_vm6, %v434_v30, 0.0  ;;  %v1261_v61 = vunpack.i.h.bf16 %v1259_v43  ;;  %v1260_v1 = vunpack.i.l.bf16 %v1259_v43  ;;  %562 = vmatpush1.bf16.msra.mxu1 %v498_v56  ;;  %vm482_vm6 = vcmp.eq.s32.totalorder %v478_v59, 1 }
 0x3bb   :  { %v442_v2 = vpack.c.bf16 %v438_v60, %v438_v60 }
 0x3bc   :  { %v433_v3 = vsel %vm1917_vm5, %v1256_v53, %v1261_v61  ;;  %v435_v4 = vsel %vm1918_vm7, %v1260_v1, %v1255_v55  ;;  %v436_v5 = vsel %vm1919_vm9, %v1261_v61, %v1260_v1  ;;  %v501_v6 = vld [vmem:[#allocation2 + $0x28] sm:$0xff]  ;;  %vm1936_vm9 = vcmask 392192  }
 0x3bd   :  { %446 = vst [vmem:[#allocation2 + $0x68] sm:$0x3] %v442_v2  ;;  %v437_v32 = vsel %vm1512_vm10, %v435_v4, 0.0  ;;  %v439_v46 = vsel %vm1491_vm8, %v433_v3, 0.0  ;;  %v440_v7 = vsel %vm1528_vm11, %v436_v5, 0.0  ;;  %522 = vmatprep.subr.bf16.mxu0 %v501_v6  ;;  %v450_v8 = vpop.permute.xlu1 %449  ;;  %vm1892_vm8 = vcmask 654336  }
 0x3be   :  { %v441_v9 = vpack.c.bf16 %v437_v32, %v437_v32  ;;  %v443_v10 = vpack.c.bf16 %v439_v46, %v439_v46  ;;  %v444_v11 = vpack.c.bf16 %v440_v7, %v440_v7  ;;  %v460_v13 = vsel %vm457_vm13, %v450_v8, %v1265_v54  ;;  %v507_v54 = vld [vmem:[#allocation2 + $0x58] sm:$0xff]  ;;  %v622_v6 = vld [vmem:[%s1880_s7] sm:$0xff]  ;;  %s1327_s7 = smov 1  }
 0x3bf   :  { %v461_v50 = vsel %vm457_vm13, %v1591_v63, %v450_v8  ;;  %v483_v39 = vsel %vm479_vm0, %v460_v13, 0.0  ;;  %v500_v16 = vld [vmem:[#allocation2 + $0x20] sm:$0xff]  ;;  %v502_v62 = vld [vmem:[#allocation2 + $0x30] sm:$0xff]  ;;  %vm657_vm13 = vcmp.lt.s32.totalorder %v1462_v19, 1  ;;  %vm1937_vm0 = vmmov %vm1936_vm9 }
 0x3c0   :  { %v503_v17 = vld [vmem:[#allocation2 + $0x38] sm:$0xff]  ;;  %445 = vst [vmem:[#allocation2 + $0x60] sm:$0x3] %v441_v9  ;;  %447 = vst [vmem:[#allocation2 + $0x70] sm:$0x3] %v443_v10  ;;  %v486_v21 = vsel %vm482_vm6, %v461_v50, 0.0  ;;  %v487_v22 = vpack.c.bf16 %v483_v39, %v483_v39  ;;  %523 = vmatpush1.bf16.msra.mxu0 %v500_v16 }
 0x3c1   :  { %448 = vst [vmem:[#allocation2 + $0x78] sm:$0x3] %v444_v11  ;;  %563 = vmatprep.subr.bf16.mxu1 %v503_v17  ;;  %v490_v51 = vpack.c.bf16 %v486_v21, %v486_v21  ;;  %524 = vmatprep.subr.bf16.mxu0 %v505_v23  ;;  %v504_v63 = vld [vmem:[#allocation2 + $0x40] sm:$0xff] }
 0x3c2   :  { %564 = vmatpush1.bf16.msra.mxu1 %v502_v62  ;;  %491 = vst [vmem:[#allocation2 + $0x80] sm:$0x3] %v487_v22 }
 0x3c3   :  { %565 = vmatprep.subr.bf16.mxu1 %v507_v54  ;;  %494 = vst [vmem:[#allocation2 + $0x98] sm:$0x3] %v490_v51 }
 0x3c4   :  { %525 = vmatpush1.bf16.msra.mxu0 %v504_v63  ;;  %v509_v24 = vld [vmem:[#allocation2 + $0x68] sm:$0xff] }
 0x3c5   :  { %526 = vmatprep.subr.bf16.mxu0 %v509_v24 }
 0x3c6   :  { %566 = vmatpush1.bf16.msra.mxu1 %v506_v25 }
 0x3c7   :  { %v508_v26 = vld [vmem:[#allocation2 + $0x60] sm:$0xff]  ;;  %v510_v28 = vld [vmem:[#allocation2 + $0x70] sm:$0xff] }
 0x3c8   :  { %v511_v27 = vld [vmem:[#allocation2 + $0x78] sm:$0xff]  ;;  %527 = vmatpush1.bf16.msra.mxu0 %v508_v26 }
 0x3c9   :  { %567 = vmatprep.subr.bf16.mxu1 %v511_v27  ;;  %528 = vmatprep.subr.bf16.mxu0 %v513_v31  ;;  %v512_v34 = vld [vmem:[#allocation2 + $0x80] sm:$0xff] }
 0x3ca   :  { %568 = vmatpush1.bf16.msra.mxu1 %v510_v28  ;;  %v515_v33 = vld [vmem:[#allocation2 + $0x98] sm:$0xff]  ;;  %v1673_v27 = vld [vmem:[%s1881_s1] sm:$0xf] }
 0x3cb   :  { %569 = vmatprep.subr.bf16.mxu1 %v515_v33  ;;  %vm76_vm10 = vcmp.ge.s32.totalorder %v1673_v27, 1  ;;  %vm75_vm11 = vcmp.lt.s32.totalorder %v1673_v27, 15  ;;  %vm80_vm6 = vcmp.ge.s32.totalorder %v1673_v27, 2 }
 0x3cc   :  { %529 = vmatpush1.bf16.msra.mxu0 %v512_v34  ;;  %v662_v28 = vsel %vm76_vm10, 1, %v1322_v0  ;;  %v716_v31 = vsel %vm75_vm11, 1, %v1322_v0  ;;  %vm902_vm10 = vcmp.lt.s32.totalorder %v1462_v19, 2  ;;  %vm79_vm11 = vcmp.lt.s32.totalorder %v1673_v27, 14 }
 0x3cd   :  { %v666_v33 = vrot.slane %v662_v28, %v1460_v18  ;;  %v670_v34 = vrot.slane %v662_v28, %v1454_v14 }
 0x3ce   :  { %570 = vmatpush1.bf16.msra.mxu1 %v514_v35 }
 0x3cf   :  { %1205 = vmatmul.mubr.msk.bf16.vlgmr.msra.gmra.mrb[4].mxu0 %vm1892_vm8, %v495_v36  ;;  %vm1686_vm14 = vcmp.eq.s32.totalorder %v666_v33, 1  ;;  %vm1690_vm15 = vcmp.eq.s32.totalorder %v670_v34, 1 }
 0x3d0   :  { %797 = vmatprep.mubr.bf16.mxu0 %v1322_v0 }
 0x3d1   :  { %1206 = vmatmul.mubr.msk.bf16.vlgmr.msra.gmra.mrb[4].mxu1 %vm1892_vm8, %v495_v36  ;;  %v724_v36 = vrot.slane %v716_v31, %v1454_v14 }
 0x3d2   :  { %838 = vmatprep.mubr.bf16.mxu1 %v1322_v0 }
 0x3d3   :  { %vm1696_vm2 = vcmp.eq.s32.totalorder %v724_v36, 1 }
 0x4a2   :  { %v554_v37 = vpop.f32.mrb[4].mxu0 }
 0x4a3   :  { %v556_v40 = vpop.f32.mrb[5].mxu0 }
 0x4a4   :  { %v595_v41 = vpop.f32.mrb[4].mxu1  ;;  %v602_v42 = vadd.f32 %v556_v40, %v554_v37  ;;  %v558_v44 = vpop.f32.mrb[6].mxu0 }
 0x4a5   :  { %v597_v45 = vpop.f32.mrb[5].mxu1  ;;  %v559_v29 = vpop.f32.mrb[7].mxu0 }
 0x4a6   :  { %v599_v47 = vpop.f32.mrb[6].mxu1  ;;  %v603_v48 = vadd.f32 %v602_v42, %v595_v41  ;;  %v720_v29 = vrot.slane %v716_v31, %v1460_v18 }
 0x4a7   :  { %v600_v49 = vpop.f32.mrb[7].mxu1 }
 0x4a8   :  { %v604_v52 = vadd.f32 %v603_v48, %v597_v45  ;;  %vm1723_vm5 = vcmp.eq.s32.totalorder %v720_v29, 1 }
 0x4aa   :  { %605 = vadd.xlane.f32.xlu1 %v604_v52 }
 0x4bb   :  { %638 = vperm.xlu1 %1231, %v635_v12  }
 0x537   :  { %v606_v53 = vpop.xlane.xlu1 %605 }
 0x538   :  { %v607_v55 = vmul.f32 0.001953125, %v606_v53 }
 0x53a   :  { %v608_v56 = vsub.f32 %v554_v37, %v607_v55  ;;  %v609_v57 = vsub.f32 %v556_v40, %v607_v55  ;;  %v610_v58 = vsub.f32 %v595_v41, %v607_v55  ;;  %v611_v38 = vsub.f32 %v597_v45, %v607_v55 }
 0x53b   :  { %v639_v13 = vpop.permute.xlu1 %638  ;;  %v674_v37 = vrot.slane %v662_v28, %v1456_v15  ;;  %v678_v40 = vrot.slane %v662_v28, %v1464_v20  ;;  %v728_v41 = vrot.slane %v716_v31, %v1456_v15 }
 0x53c   :  { %v612_v30 = vmul.f32 %v608_v56, %v608_v56  ;;  %v613_v43 = vmul.f32 %v609_v57, %v609_v57  ;;  %v614_v59 = vmul.f32 %v610_v58, %v610_v58  ;;  %v615_v61 = vmul.f32 %v611_v38, %v611_v38 }
 0x53d   :  { %vm1700_vm3 = vcmp.eq.s32.totalorder %v674_v37, 1  ;;  %vm1704_vm12 = vcmp.eq.s32.totalorder %v678_v40, 1  ;;  %vm1712_vm4 = vcmp.eq.s32.totalorder %v728_v41, 1  ;;  %v749_v37 = vld [vmem:[%s1882_s9] sm:$0xf] }
 0x53e   :  { %v616_v60 = vadd.f32 %v613_v43, %v612_v30  ;;  %v732_v30 = vrot.slane %v716_v31, %v1464_v20 }
 0x540   :  { %v617_v1 = vadd.f32 %v616_v60, %v614_v59  ;;  %vm1741_vm7 = vcmp.eq.s32.totalorder %v732_v30, 1 }
 0x542   :  { %v618_v2 = vadd.f32 %v617_v1, %v615_v61 }
 0x544   :  { %619 = vadd.xlane.f32.xlu0 %v618_v2 }
 0x5d1   :  { %v620_v3 = vpop.xlane.xlu0 %619 }
 0x5d2   :  { %v621_v4 = vmul.f32 0.001953125, %v620_v3 }
 0x5d4   :  { %v623_v5 = vadd.f32 0.001, %v621_v4 }
 0x5d6   :  { %1316 = vrsqrt.f32 %v623_v5 }
 0x5e0   :  { %v1317_v32 = vpop.eup %1316 }
 0x5e1   :  { %v625_v46 = vmul.f32 %v1317_v32, %v622_v6 }
 0x5e3   :  { %628 = vperm.xlu0 %1230, %v625_v46  }
 0x662   :  { %v629_v7 = vpop.permute.xlu0 %628 }
 0x663   :  { %v631_v8 = vmul.f32 %v629_v7, %v608_v56  ;;  %v632_v9 = vmul.f32 %v629_v7, %v609_v57  ;;  %v633_v10 = vmul.f32 %v629_v7, %v610_v58  ;;  %v634_v11 = vmul.f32 %v629_v7, %v611_v38 }
 0x665   :  { %v641_v50 = vadd.f32 %v639_v13, %v631_v8  ;;  %v642_v39 = vadd.f32 %v639_v13, %v632_v9  ;;  %v643_v16 = vadd.f32 %v639_v13, %v633_v10  ;;  %v644_v17 = vadd.f32 %v639_v13, %v634_v11 }
 0x667   :  { %v645_v62 = vmax.f32 %v641_v50, 0.0  ;;  %v646_v21 = vmax.f32 %v642_v39, 0.0  ;;  %v647_v22 = vmax.f32 %v643_v16, 0.0  ;;  %v648_v23 = vmax.f32 %v644_v17, 0.0 }
 0x669   :  { %v695_v51 = vpack.c.bf16 %v645_v62, %v645_v62  ;;  %v696_v54 = vpack.c.bf16 %v646_v21, %v646_v21  ;;  %v697_v63 = vpack.c.bf16 %v647_v22, %v647_v22  ;;  %655 = vrot.lane.b32.xlu0 %v648_v23, %s1327_s7  ;;  %v698_v24 = vpack.c.bf16 %v648_v23, %v648_v23 }
 0x66a   :  { %v1267_v25 = vpack.i.bf16 %v646_v21, %v645_v62  ;;  %v1272_v26 = vpack.i.bf16 %v647_v22, %v646_v21 }
 0x66b   :  { %699 = vst [vmem:[#allocation2 + $0x20] sm:$0xf] %v695_v51  ;;  %700 = vst [vmem:[#allocation2 + $0x28] sm:$0xf] %v696_v54 }
 0x66c   :  { %701 = vst [vmem:[#allocation2 + $0x30] sm:$0xf] %v697_v63  ;;  %702 = vst [vmem:[#allocation2 + $0x38] sm:$0xf] %v698_v24  ;;  %1268 = vrot.lane.b32.xlu1 %v1267_v25, %s1327_s7 }
 0x66d   :  { %1273 = vrot.lane.b32.xlu0 %v1272_v26, %s1328_s18 }
 0x670   :  { %653 = vrot.lane.b32.xlu1 %v647_v22, %s1327_s7 }
 0x671   :  { %709 = vrot.lane.b32.xlu0 %v648_v23, %s1328_s18 }
 0x672   :  { %v755_v24 = vld [vmem:[#allocation2 + $0x28] sm:$0xff]  ;;  %v754_v31 = vld [vmem:[#allocation2 + $0x20] sm:$0xff] }
 0x673   :  { %v757_v28 = vld [vmem:[#allocation2 + $0x38] sm:$0xff]  ;;  %v756_v34 = vld [vmem:[#allocation2 + $0x30] sm:$0xff] }
 0x674   :  { %703 = vrot.lane.b32.xlu1 %v645_v62, %s1328_s18 }
 0x6db   :  { %v656_v35 = vpop.permute.xlu0 %655 }
 0x6de   :  { %v1269_v45 = vpop.permute.xlu1 %1268 }
 0x6df   :  { %v1271_v47 = vunpack.i.h.bf16 %v1269_v45  ;;  %v1270_v48 = vunpack.i.l.bf16 %v1269_v45  ;;  %v1274_v52 = vpop.permute.xlu0 %1273 }
 0x6e0   :  { %v1276_v12 = vunpack.i.h.bf16 %v1274_v52  ;;  %v1275_v53 = vunpack.i.l.bf16 %v1274_v52 }
 0x6e1   :  { %v660_v57 = vsel %vm657_vm13, %v1270_v48, %v1271_v47  ;;  %v661_v58 = vsel %vm657_vm13, %v656_v35, %v1270_v48 }
 0x6e2   :  { %v683_v43 = vsel %vm1686_vm14, %v661_v58, 0.0  ;;  %v684_v59 = vsel %vm1690_vm15, %v660_v57, 0.0  ;;  %v713_v60 = vsel %vm1893_vm1, %v1275_v53, %v1276_v12  ;;  %v654_v61 = vpop.permute.xlu1 %653 }
 0x6e3   :  { %v687_v2 = vpack.c.bf16 %v683_v43, %v683_v43  ;;  %v688_v3 = vpack.c.bf16 %v684_v59, %v684_v59  ;;  %v738_v4 = vsel %vm1696_vm2, %v713_v60, 0.0  ;;  %v658_v5 = vsel %vm657_vm13, %v654_v61, %v656_v35  ;;  %v710_v6 = vpop.permute.xlu0 %709  ;;  %v880_v43 = vld [vmem:[%s1883_s11] sm:$0xff] }
 0x6e4   :  { %v742_v32 = vpack.c.bf16 %v738_v4, %v738_v4  ;;  %v659_v46 = vsel %vm657_vm13, %v1271_v47, %v654_v61  ;;  %v686_v7 = vsel %vm1704_vm12, %v658_v5, 0.0  ;;  %v712_v8 = vsel %vm1893_vm1, %v1276_v12, %v710_v6 }
 0x6e5   :  { %691 = vst [vmem:[#allocation2] sm:$0xf] %v687_v2  ;;  %692 = vst [vmem:[#allocation2 + $0x8] sm:$0xf] %v688_v3  ;;  %v685_v9 = vsel %vm1700_vm3, %v659_v46, 0.0  ;;  %v690_v10 = vpack.c.bf16 %v686_v7, %v686_v7  ;;  %v739_v11 = vsel %vm1712_vm4, %v712_v8, 0.0 }
 0x6e6   :  { %746 = vst [vmem:[#allocation2 + $0x48] sm:$0xf] %v742_v32  ;;  %v689_v50 = vpack.c.bf16 %v685_v9, %v685_v9  ;;  %v743_v39 = vpack.c.bf16 %v739_v11, %v739_v11  ;;  %v704_v16 = vpop.permute.xlu1 %703 }
 0x6e7   :  { %694 = vst [vmem:[#allocation2 + $0x18] sm:$0xf] %v690_v10  ;;  %v714_v17 = vsel %vm1893_vm1, %v704_v16, %v1275_v53  ;;  %v715_v62 = vsel %vm1893_vm1, %v710_v6, %v704_v16 }
 0x6e8   :  { %693 = vst [vmem:[#allocation2 + $0x10] sm:$0xf] %v689_v50  ;;  %747 = vst [vmem:[#allocation2 + $0x50] sm:$0xf] %v743_v39  ;;  %v737_v21 = vsel %vm1723_vm5, %v714_v17, 0.0  ;;  %v740_v22 = vsel %vm1741_vm7, %v715_v62, 0.0 }
 0x6e9   :  { %v741_v23 = vpack.c.bf16 %v737_v21, %v737_v21  ;;  %v744_v51 = vpack.c.bf16 %v740_v22, %v740_v22  ;;  %v867_v39 = vld [vmem:[%s1884_s10] sm:$0xff]  ;;  %s1329_s10 = smov 2  }
 0x6eb   :  { %745 = vst [vmem:[#allocation2 + $0x40] sm:$0xf] %v741_v23  ;;  %748 = vst [vmem:[#allocation2 + $0x58] sm:$0xf] %v744_v51 }
 0x6ec   :  { %v751_v54 = vld [vmem:[#allocation2 + $0x8] sm:$0xff]  ;;  %v750_v63 = vld [vmem:[#allocation2] sm:$0xff] }
 0x6ed   :  { %765 = vmatprep.subr.bf16.mxu0 %v751_v54  ;;  %v759_v33 = vld [vmem:[#allocation2 + $0x48] sm:$0xff] }
 0x6ee   :  { %766 = vmatpush1.bf16.msra.mxu0 %v750_v63  ;;  %v753_v25 = vld [vmem:[#allocation2 + $0x18] sm:$0xff] }
 0x6ef   :  { %767 = vmatprep.subr.bf16.mxu0 %v755_v24  ;;  %806 = vmatprep.subr.bf16.mxu1 %v753_v25  ;;  %v752_v26 = vld [vmem:[#allocation2 + $0x10] sm:$0xff] }
 0x6f0   :  { %807 = vmatpush1.bf16.msra.mxu1 %v752_v26  ;;  %v760_v40 = vld [vmem:[#allocation2 + $0x50] sm:$0xff] }
 0x6f1   :  { %808 = vmatprep.subr.bf16.mxu1 %v757_v28 }
 0x6f2   :  { %768 = vmatpush1.bf16.msra.mxu0 %v754_v31  ;;  %v761_v35 = vld [vmem:[#allocation2 + $0x58] sm:$0xff]  ;;  %v758_v36 = vld [vmem:[#allocation2 + $0x40] sm:$0xff] }
 0x6f3   :  { %769 = vmatprep.subr.bf16.mxu0 %v759_v33 }
 0x6f4   :  { %809 = vmatpush1.bf16.msra.mxu1 %v756_v34 }
 0x6f5   :  { %810 = vmatprep.subr.bf16.mxu1 %v761_v35 }
 0x6f6   :  { %770 = vmatpush1.bf16.msra.mxu0 %v758_v36 }
 0x6f8   :  { %811 = vmatpush1.bf16.msra.mxu1 %v760_v40 }
 0x6f9   :  { %1207 = vmatmul.mubr.msk.bf16.vlgmr.msra.gmra.mrb[8].mxu0 %vm1936_vm9, %v749_v37 }
 0x6fa   :  { %1098 = vmatprep.mubr.bf16.mxu0 %v1322_v0 }
 0x6fb   :  { %1208 = vmatmul.mubr.msk.bf16.vlgmr.msra.gmra.mrb[8].mxu1 %vm1937_vm0, %v749_v37 }
 0x6fc   :  { %1139 = vmatprep.mubr.bf16.mxu1 %v1322_v0 }
 0x7cc   :  { %v799_v41 = vpop.f32.mrb[8].mxu0 }
 0x7cd   :  { %v801_v45 = vpop.f32.mrb[9].mxu0 }
 0x7ce   :  { %v847_v29 = vadd.f32 %v801_v45, %v799_v41  ;;  %v803_v47 = vpop.f32.mrb[10].mxu0  ;;  %v840_v48 = vpop.f32.mrb[8].mxu1 }
 0x7cf   :  { %v804_v52 = vpop.f32.mrb[11].mxu0  ;;  %v842_v12 = vpop.f32.mrb[9].mxu1 }
 0x7d0   :  { %v848_v53 = vadd.f32 %v847_v29, %v840_v48  ;;  %v844_v57 = vpop.f32.mrb[10].mxu1 }
 0x7d1   :  { %v845_v58 = vpop.f32.mrb[11].mxu1 }
 0x7d2   :  { %v849_v30 = vadd.f32 %v848_v53, %v842_v12 }
 0x7d4   :  { %850 = vadd.xlane.f32.xlu1 %v849_v30 }
 0x7e5   :  { %883 = vperm.xlu1 %1231, %v880_v43  }
 0x861   :  { %v851_v59 = vpop.xlane.xlu1 %850 }
 0x862   :  { %v852_v60 = vmul.f32 0.001953125, %v851_v59 }
 0x864   :  { %v853_v61 = vsub.f32 %v799_v41, %v852_v60  ;;  %v854_v2 = vsub.f32 %v801_v45, %v852_v60  ;;  %v855_v3 = vsub.f32 %v840_v48, %v852_v60  ;;  %v856_v4 = vsub.f32 %v842_v12, %v852_v60 }
 0x865   :  { %v884_v54 = vpop.permute.xlu1 %883  ;;  %v907_v48 = vsel %vm80_vm6, 1, %v1322_v0 }
 0x866   :  { %v857_v5 = vmul.f32 %v853_v61, %v853_v61  ;;  %v858_v6 = vmul.f32 %v854_v2, %v854_v2  ;;  %v859_v32 = vmul.f32 %v855_v3, %v855_v3  ;;  %v860_v7 = vmul.f32 %v856_v4, %v856_v4 }
 0x867   :  { %v923_v52 = vrot.slane %v907_v48, %v1464_v20  ;;  %v911_v12 = vrot.slane %v907_v48, %v1460_v18  ;;  %v915_v53 = vrot.slane %v907_v48, %v1454_v14  ;;  %v919_v57 = vrot.slane %v907_v48, %v1456_v15 }
 0x868   :  { %v861_v46 = vadd.f32 %v858_v6, %v857_v5 }
 0x869   :  { %vm927_vm9 = vcmp.eq.s32.totalorder %v923_v52, 1  ;;  %vm924_vm0 = vcmp.eq.s32.totalorder %v911_v12, 1  ;;  %vm925_vm8 = vcmp.eq.s32.totalorder %v915_v53, 1  ;;  %vm926_vm1 = vcmp.eq.s32.totalorder %v919_v57, 1 }
 0x86a   :  { %v862_v8 = vadd.f32 %v861_v46, %v859_v32 }
 0x86c   :  { %v863_v9 = vadd.f32 %v862_v8, %v860_v7 }
 0x86e   :  { %864 = vadd.xlane.f32.xlu0 %v863_v9 }
 0x8fb   :  { %v865_v10 = vpop.xlane.xlu0 %864 }
 0x8fc   :  { %v866_v11 = vmul.f32 0.001953125, %v865_v10 }
 0x8fe   :  { %v868_v50 = vadd.f32 0.001, %v866_v11 }
 0x900   :  { %1318 = vrsqrt.f32 %v868_v50 }
 0x90a   :  { %v1319_v16 = vpop.eup %1318 }
 0x90b   :  { %v870_v17 = vmul.f32 %v1319_v16, %v867_v39 }
 0x90d   :  { %873 = vperm.xlu0 %1230, %v870_v17  }
 0x98c   :  { %v874_v62 = vpop.permute.xlu0 %873 }
 0x98d   :  { %v876_v21 = vmul.f32 %v874_v62, %v853_v61  ;;  %v877_v22 = vmul.f32 %v874_v62, %v854_v2  ;;  %v878_v23 = vmul.f32 %v874_v62, %v855_v3  ;;  %v879_v51 = vmul.f32 %v874_v62, %v856_v4 }
 0x98e   :  { %v1779_v2 = vsel %vm79_vm11, 1, %v1322_v0 }
 0x98f   :  { %v886_v63 = vadd.f32 %v884_v54, %v876_v21  ;;  %v887_v24 = vadd.f32 %v884_v54, %v877_v22  ;;  %v888_v25 = vadd.f32 %v884_v54, %v878_v23  ;;  %v889_v26 = vadd.f32 %v884_v54, %v879_v51 }
 0x990   :  { %v1013_v21 = vrot.slane %v1779_v2, %v1460_v18  ;;  %v1017_v22 = vrot.slane %v1779_v2, %v1454_v14  ;;  %v1025_v23 = vrot.slane %v1779_v2, %v1464_v20  ;;  %v1021_v42 = vrot.slane %v1779_v2, %v1456_v15 }
 0x991   :  { %v890_v28 = vmax.f32 %v886_v63, 0.0  ;;  %v891_v31 = vmax.f32 %v887_v24, 0.0  ;;  %v892_v33 = vmax.f32 %v888_v25, 0.0  ;;  %v893_v34 = vmax.f32 %v889_v26, 0.0 }
 0x993   :  { %v964_v35 = vpack.c.bf16 %v890_v28, %v890_v28  ;;  %v965_v36 = vpack.c.bf16 %v891_v31, %v891_v31  ;;  %v966_v37 = vpack.c.bf16 %v892_v33, %v892_v33  ;;  %v967_v40 = vpack.c.bf16 %v893_v34, %v893_v34 }
 0x994   :  { %v1282_v41 = vpack.i.bf16 %v892_v33, %v893_v34  ;;  %v1277_v45 = vpack.i.bf16 %v891_v31, %v890_v28  ;;  %v1302_v29 = vpack.i.bf16 %v893_v34, %v890_v28  ;;  %v1297_v47 = vpack.i.bf16 %v892_v33, %v891_v31 }
 0x995   :  { %968 = vst [vmem:[#allocation2 + $0x40] sm:$0xf] %v964_v35  ;;  %969 = vst [vmem:[#allocation2 + $0x48] sm:$0xf] %v965_v36 }
 0x996   :  { %970 = vst [vmem:[#allocation2 + $0x50] sm:$0xf] %v966_v37  ;;  %971 = vst [vmem:[#allocation2 + $0x58] sm:$0xf] %v967_v40  ;;  %1283 = vrot.lane.b32.xlu0 %v1282_v41, %s1329_s10  ;;  %1278 = vrot.lane.b32.xlu1 %v1277_v45, %s1329_s10 }
 0x99a   :  { %1293 = vrot.lane.b32.xlu0 %v1282_v41, %s1327_s7  ;;  %1288 = vrot.lane.b32.xlu1 %v1277_v45, %s1327_s7 }
 0x99e   :  { %1303 = vrot.lane.b32.xlu0 %v1302_v29, %s1328_s18  ;;  %1298 = vrot.lane.b32.xlu1 %v1297_v47, %s1328_s18 }
 0x9a2   :  { %996 = vrot.lane.b32.xlu0 %v890_v28, %s1330_s23  ;;  %1308 = vrot.lane.b32.xlu1 %v1297_v47, %s1330_s23 }
 0x9a6   :  { %1002 = vrot.lane.b32.xlu1 %v893_v34, %s1330_s23 }
 0xa08   :  { %v1284_v58 = vpop.permute.xlu0 %1283  ;;  %v1279_v30 = vpop.permute.xlu1 %1278 }
 0xa09   :  { %v1286_v43 = vunpack.i.h.bf16 %v1284_v58  ;;  %v1285_v59 = vunpack.i.l.bf16 %v1284_v58  ;;  %v1281_v60 = vunpack.i.h.bf16 %v1279_v30  ;;  %v1280_v61 = vunpack.i.l.bf16 %v1279_v30 }
 0xa0b   :  { %v903_v3 = vsel %vm902_vm10, %v1286_v43, %v1285_v59  ;;  %v904_v4 = vsel %vm902_vm10, %v1281_v60, %v1286_v43  ;;  %v905_v27 = vsel %vm902_vm10, %v1280_v61, %v1281_v60  ;;  %v906_v5 = vsel %vm902_vm10, %v1285_v59, %v1280_v61 }
 0xa0c   :  { %v931_v6 = vsel %vm927_vm9, %v903_v3, 0.0  ;;  %v930_v32 = vsel %vm926_vm1, %v904_v4, 0.0  ;;  %v928_v46 = vsel %vm924_vm0, %v906_v5, 0.0  ;;  %v929_v7 = vsel %vm925_vm8, %v905_v27, 0.0  ;;  %v1294_v8 = vpop.permute.xlu0 %1293  ;;  %v1289_v9 = vpop.permute.xlu1 %1288 }
 0xa0d   :  { %v935_v0 = vpack.c.bf16 %v931_v6, %v931_v6  ;;  %v934_v10 = vpack.c.bf16 %v930_v32, %v930_v32  ;;  %v932_v11 = vpack.c.bf16 %v928_v46, %v928_v46  ;;  %v933_v50 = vpack.c.bf16 %v929_v7, %v929_v7 }
 0xa0e   :  { %v1296_v39 = vunpack.i.h.bf16 %v1294_v8  ;;  %v1295_v16 = vunpack.i.l.bf16 %v1294_v8  ;;  %v1291_v17 = vunpack.i.h.bf16 %v1289_v9  ;;  %v1290_v62 = vunpack.i.l.bf16 %v1289_v9 }
 0xa0f   :  { %939 = vst [vmem:[#allocation2 + $0x18] sm:$0xf] %v935_v0  ;;  %938 = vst [vmem:[#allocation2 + $0x10] sm:$0xf] %v934_v10  ;;  %vm1004_vm8 = vcmp.lt.s32.totalorder %v1462_v19, 126 }
 0xa10   :  { %936 = vst [vmem:[#allocation2] sm:$0xf] %v932_v11  ;;  %937 = vst [vmem:[#allocation2 + $0x8] sm:$0xf] %v933_v50  ;;  %v948_v51 = vsel %vm657_vm13, %v1296_v39, %v1295_v16  ;;  %v949_v54 = vsel %vm657_vm13, %v1291_v17, %v1296_v39  ;;  %v950_v63 = vsel %vm657_vm13, %v1290_v62, %v1291_v17  ;;  %v1304_v25 = vpop.permute.xlu0 %1303  ;;  %v1299_v18 = vpop.permute.xlu1 %1298  ;;  %v1054_v17 = vld [vmem:[#allocation2 + $0x58] sm:$0xff] }
 0xa11   :  { %v951_v24 = vsel %vm657_vm13, %v1295_v16, %v1290_v62  ;;  %v955_v14 = vsel %vm1704_vm12, %v948_v51, 0.0  ;;  %v954_v20 = vsel %vm1700_vm3, %v949_v54, 0.0  ;;  %v953_v28 = vsel %vm1690_vm15, %v950_v63, 0.0  ;;  %v1051_v62 = vld [vmem:[#allocation2 + $0x40] sm:$0xff] }
 0xa12   :  { %v952_v26 = vsel %vm1686_vm14, %v951_v24, 0.0  ;;  %v959_v31 = vpack.c.bf16 %v955_v14, %v955_v14  ;;  %v958_v33 = vpack.c.bf16 %v954_v20, %v954_v20  ;;  %v957_v35 = vpack.c.bf16 %v953_v28, %v953_v28  ;;  %v1042_v14 = vld [vmem:[%s1885_s12] sm:$0xf] }
 0xa13   :  { %v956_v34 = vpack.c.bf16 %v952_v26, %v952_v26  ;;  %v1306_v36 = vunpack.i.h.bf16 %v1304_v25  ;;  %v1305_v37 = vunpack.i.l.bf16 %v1304_v25  ;;  %v1301_v40 = vunpack.i.h.bf16 %v1299_v18 }
 0xa14   :  { %v1300_v41 = vunpack.i.l.bf16 %v1299_v18  ;;  %963 = vst [vmem:[#allocation2 + $0x38] sm:$0xf] %v959_v31  ;;  %962 = vst [vmem:[#allocation2 + $0x30] sm:$0xf] %v958_v33  ;;  %v1309_v55 = vpop.permute.xlu1 %1308  ;;  %vm1814_vm13 = vcmp.eq.s32.totalorder %v1013_v21, 1  ;;  %vm1818_vm14 = vcmp.eq.s32.totalorder %v1025_v23, 1  ;;  %v997_v13 = vpop.permute.xlu0 %996 }
 0xa15   :  { %960 = vst [vmem:[#allocation2 + $0x20] sm:$0xf] %v956_v34  ;;  %961 = vst [vmem:[#allocation2 + $0x28] sm:$0xf] %v957_v35  ;;  %vm1942_vm15 = vcmp.lt.s32.totalorder %v1462_v19, 127  ;;  %v1311_v3 = vunpack.i.h.bf16 %v1309_v55  ;;  %v1310_v4 = vunpack.i.l.bf16 %v1309_v55  ;;  %v1052_v19 = vld [vmem:[#allocation2 + $0x48] sm:$0xff] }
 0xa16   :  { %v983_v45 = vsel %vm1942_vm15, %v1306_v36, %v1305_v37  ;;  %vm1943_vm1 = vmmov %vm1942_vm15  ;;  %v1046_v58 = vld [vmem:[#allocation2 + $0x18] sm:$0xff]  ;;  %v1045_v2 = vld [vmem:[#allocation2 + $0x10] sm:$0xff] }
 0xa17   :  { %v980_v29 = vsel %vm1943_vm1, %v1301_v40, %v1306_v36  ;;  %vm1944_vm3 = vmmov %vm1943_vm1  ;;  %v987_v48 = vsel %vm1741_vm7, %v983_v45, 0.0  ;;  %v1044_v57 = vld [vmem:[#allocation2 + $0x8] sm:$0xff]  ;;  %v1043_v61 = vld [vmem:[#allocation2] sm:$0xff]  ;;  %1107 = vmatprep.subr.bf16.mxu1 %v1046_v58  ;;  %vm1028_vm7 = vcmp.eq.s32.totalorder %v1021_v42, 1  ;;  %v1006_v27 = vsel %vm1004_vm8, %v1310_v4, %v1311_v3 }
 0xa18   :  { %v981_v47 = vsel %vm1944_vm3, %v1300_v41, %v1301_v40  ;;  %vm1945_vm12 = vmmov %vm1943_vm1  ;;  %v986_v52 = vsel %vm1712_vm4, %v980_v29, 0.0  ;;  %v991_v30 = vpack.c.bf16 %v987_v48, %v987_v48  ;;  %1066 = vmatprep.subr.bf16.mxu0 %v1044_v57  ;;  %vm1027_vm4 = vcmp.eq.s32.totalorder %v1017_v22, 1  ;;  %v1003_v38 = vpop.permute.xlu1 %1002  ;;  %1108 = vmatpush1.bf16.msra.mxu1 %v1045_v2  ;;  %v1053_v21 = vld [vmem:[#allocation2 + $0x50] sm:$0xff]  ;;  %v1181_v58 = vld [vmem:[%s1886_s14] sm:$0xff] }
 0xa19   :  { %v982_v15 = vsel %vm1945_vm12, %v1305_v37, %v1300_v41  ;;  %v985_v53 = vsel %vm1696_vm2, %v981_v47, 0.0  ;;  %v990_v43 = vpack.c.bf16 %v986_v52, %v986_v52  ;;  %1067 = vmatpush1.bf16.msra.mxu0 %v1043_v61  ;;  %v1008_v49 = vsel %vm1004_vm8, %v1003_v38, %v997_v13 }
 0xa1a   :  { %v984_v12 = vsel %vm1723_vm5, %v982_v15, 0.0  ;;  %v989_v60 = vpack.c.bf16 %v985_v53, %v985_v53  ;;  %995 = vst [vmem:[#allocation2 + $0x78] sm:$0xf] %v991_v30  ;;  %v1005_v1 = vsel %vm1004_vm8, %v1311_v3, %v1003_v38  ;;  %v1007_v5 = vsel %vm1004_vm8, %v997_v13, %v1310_v4 }
 0xa1b   :  { %v988_v59 = vpack.c.bf16 %v984_v12, %v984_v12  ;;  %994 = vst [vmem:[#allocation2 + $0x70] sm:$0xf] %v990_v43  ;;  %v1033_v6 = vsel %vm1818_vm14, %v1008_v49, 0.0  ;;  %v1030_v32 = vsel %vm1814_vm13, %v1007_v5, 0.0  ;;  %v1031_v46 = vsel %vm1027_vm4, %v1006_v27, 0.0  ;;  %v1050_v0 = vld [vmem:[#allocation2 + $0x38] sm:$0xff] }
 0xa1c   :  { %993 = vst [vmem:[#allocation2 + $0x68] sm:$0xf] %v989_v60  ;;  %v1032_v7 = vsel %vm1028_vm7, %v1005_v1, 0.0  ;;  %v1037_v8 = vpack.c.bf16 %v1033_v6, %v1033_v6  ;;  %v1048_v9 = vld [vmem:[#allocation2 + $0x28] sm:$0xff]  ;;  %v1047_v10 = vld [vmem:[#allocation2 + $0x20] sm:$0xff]  ;;  %v1034_v11 = vpack.c.bf16 %v1030_v32, %v1030_v32  ;;  %v1035_v50 = vpack.c.bf16 %v1031_v46, %v1031_v46  ;;  %1109 = vmatprep.subr.bf16.mxu1 %v1050_v0  ;;  %v1049_v16 = vld [vmem:[#allocation2 + $0x30] sm:$0xff] }
 0xa1d   :  { %992 = vst [vmem:[#allocation2 + $0x60] sm:$0xf] %v988_v59  ;;  %v1036_v39 = vpack.c.bf16 %v1032_v7, %v1032_v7  ;;  %1068 = vmatprep.subr.bf16.mxu0 %v1048_v9  ;;  %1110 = vmatpush1.bf16.msra.mxu1 %v1049_v16  ;;  %vm1946_vm2 = vcmask 654336   ;;  %v1168_v60 = vld [vmem:[%s1887_s13] sm:$0xff] }
 0xa1e   :  { %1041 = vst [vmem:[#allocation2 + $0x98] sm:$0xf] %v1037_v8  ;;  %1069 = vmatpush1.bf16.msra.mxu0 %v1047_v10  ;;  %1038 = vst [vmem:[#allocation2 + $0x80] sm:$0xf] %v1034_v11  ;;  %1111 = vmatprep.subr.bf16.mxu1 %v1054_v17 }
 0xa1f   :  { %1039 = vst [vmem:[#allocation2 + $0x88] sm:$0xf] %v1035_v50  ;;  %1040 = vst [vmem:[#allocation2 + $0x90] sm:$0xf] %v1036_v39  ;;  %1070 = vmatprep.subr.bf16.mxu0 %v1052_v19 }
 0xa20   :  { %vm1947_vm5 = vmmov %vm1946_vm2 }
 0xa21   :  { %1112 = vmatpush1.bf16.msra.mxu1 %v1053_v21  ;;  %v1058_v23 = vld [vmem:[#allocation2 + $0x78] sm:$0xff] }
 0xa22   :  { %1071 = vmatpush1.bf16.msra.mxu0 %v1051_v62  ;;  %1113 = vmatprep.subr.bf16.mxu1 %v1058_v23  ;;  %v1057_v54 = vld [vmem:[#allocation2 + $0x70] sm:$0xff] }
 0xa23   :  { %v1056_v22 = vld [vmem:[#allocation2 + $0x68] sm:$0xff] }
 0xa24   :  { %1072 = vmatprep.subr.bf16.mxu0 %v1056_v22  ;;  %v1055_v51 = vld [vmem:[#allocation2 + $0x60] sm:$0xff] }
 0xa25   :  { %v1062_v63 = vld [vmem:[#allocation2 + $0x98] sm:$0xff]  ;;  %1114 = vmatpush1.bf16.msra.mxu1 %v1057_v54  ;;  %v1059_v25 = vld [vmem:[#allocation2 + $0x80] sm:$0xff] }
 0xa26   :  { %1073 = vmatpush1.bf16.msra.mxu0 %v1055_v51  ;;  %v1060_v24 = vld [vmem:[#allocation2 + $0x88] sm:$0xff]  ;;  %1115 = vmatprep.subr.bf16.mxu1 %v1062_v63  ;;  %v1061_v18 = vld [vmem:[#allocation2 + $0x90] sm:$0xff] }
 0xa27   :  { %1074 = vmatprep.subr.bf16.mxu0 %v1060_v24 }
 0xa29   :  { %1116 = vmatpush1.bf16.msra.mxu1 %v1061_v18 }
 0xa2a   :  { %1075 = vmatpush1.bf16.msra.mxu0 %v1059_v25 }
 0xa2c   :  { %1210 = vmatmul.mubr.msk.bf16.vlgmr.msra.gmra.mrb[12].mxu1 %vm1947_vm5, %v1042_v14 }
 0xa2d   :  { %1209 = vmatmul.mubr.msk.bf16.vlgmr.msra.gmra.mrb[12].mxu0 %vm1946_vm2, %v1042_v14 }
 0xaff   :  { %v1141_v26 = vpop.f32.mrb[12].mxu1 }
 0xb00   :  { %v1100_v20 = vpop.f32.mrb[12].mxu0  ;;  %v1143_v31 = vpop.f32.mrb[13].mxu1 }
 0xb01   :  { %v1102_v28 = vpop.f32.mrb[13].mxu0  ;;  %v1145_v35 = vpop.f32.mrb[14].mxu1 }
 0xb02   :  { %v1148_v33 = vadd.f32 %v1102_v28, %v1100_v20  ;;  %v1104_v34 = vpop.f32.mrb[14].mxu0  ;;  %v1146_v37 = vpop.f32.mrb[15].mxu1 }
 0xb03   :  { %v1105_v36 = vpop.f32.mrb[15].mxu0 }
 0xb04   :  { %v1149_v40 = vadd.f32 %v1148_v33, %v1141_v26 }
 0xb06   :  { %v1150_v41 = vadd.f32 %v1149_v40, %v1143_v31 }
 0xb08   :  { %1151 = vadd.xlane.f32.xlu0 %v1150_v41 }
 0xb95   :  { %v1152_v55 = vpop.xlane.xlu0 %1151 }
 0xb96   :  { %v1153_v42 = vmul.f32 0.001953125, %v1152_v55 }
 0xb98   :  { %v1154_v44 = vsub.f32 %v1100_v20, %v1153_v42  ;;  %v1155_v56 = vsub.f32 %v1102_v28, %v1153_v42  ;;  %v1156_v45 = vsub.f32 %v1141_v26, %v1153_v42  ;;  %v1157_v29 = vsub.f32 %v1143_v31, %v1153_v42 }
 0xb9a   :  { %v1158_v47 = vmul.f32 %v1154_v44, %v1154_v44  ;;  %v1159_v15 = vmul.f32 %v1155_v56, %v1155_v56  ;;  %v1160_v48 = vmul.f32 %v1156_v45, %v1156_v45  ;;  %v1161_v12 = vmul.f32 %v1157_v29, %v1157_v29 }
 0xb9c   :  { %v1162_v52 = vadd.f32 %v1159_v15, %v1158_v47 }
 0xb9e   :  { %v1163_v53 = vadd.f32 %v1162_v52, %v1160_v48 }
 0xba0   :  { %v1164_v57 = vadd.f32 %v1163_v53, %v1161_v12 }
 0xba2   :  { %1165 = vadd.xlane.f32.xlu1 %v1164_v57 }
 0xbb3   :  { %1184 = vperm.xlu1 %1231, %v1181_v58  }
 0xc2f   :  { %v1166_v30 = vpop.xlane.xlu1 %1165 }
 0xc30   :  { %v1167_v43 = vmul.f32 0.001953125, %v1166_v30 }
 0xc32   :  { %v1169_v59 = vadd.f32 0.001, %v1167_v43 }
 0xc33   :  { %v1185_v1 = vpop.permute.xlu1 %1184 }
 0xc34   :  { %1320 = vrsqrt.f32 %v1169_v59 }
 0xc3e   :  { %v1321_v61 = vpop.eup %1320 }
 0xc3f   :  { %v1171_v2 = vmul.f32 %v1321_v61, %v1168_v60 }
 0xc41   :  { %1174 = vperm.xlu0 %1230, %v1171_v2  }
 0xcc0   :  { %v1175_v13 = vpop.permute.xlu0 %1174 }
 0xcc1   :  { %v1177_v3 = vmul.f32 %v1175_v13, %v1154_v44  ;;  %v1178_v4 = vmul.f32 %v1175_v13, %v1155_v56  ;;  %v1179_v38 = vmul.f32 %v1175_v13, %v1156_v45  ;;  %v1180_v49 = vmul.f32 %v1175_v13, %v1157_v29 }
 0xcc3   :  { %v1187_v27 = vadd.f32 %v1185_v1, %v1177_v3  ;;  %v1188_v5 = vadd.f32 %v1185_v1, %v1178_v4  ;;  %v1189_v6 = vadd.f32 %v1185_v1, %v1179_v38  ;;  %v1190_v32 = vadd.f32 %v1185_v1, %v1180_v49 }
 0xcc5   :  { %v1191_v46 = vmax.f32 %v1187_v27, 0.0  ;;  %v1192_v7 = vmax.f32 %v1188_v5, 0.0  ;;  %v1193_v8 = vmax.f32 %v1189_v6, 0.0  ;;  %v1194_v9 = vmax.f32 %v1190_v32, 0.0 }
 0xcc7   :  { %1195 = vst [vmem:[%s1888_s15] sm:$0xff] %v1191_v46  ;;  %1196 = vst [vmem:[%s1888_s15 + $0x8] sm:$0xff] %v1192_v7 }
 0xcc8   :  { %1197 = vst [vmem:[%s1888_s15 + $0x10] sm:$0xff] %v1193_v8  ;;  %1198 = vst [vmem:[%s1888_s15 + $0x18] sm:$0xff] %v1194_v9 }

</bundles_post_ra>
